<compile_context>
chip_gen: v7x
topology: tpu7x:2x2x1
jax: 0.10.0
libtpu: 0.0.40
codegen_flags: <defaults>
</compile_context>

<pallas_src>
import jax
import jax.numpy as jnp
import numpy as np
from jax.experimental import pallas as pl
from jax.experimental.pallas import tpu as pltpu

LANES = 128


# ----------------------------- schedules (glue) -----------------------------
def ddpm_schedules(beta1, beta2, T):
    assert 0.0 < beta1 < beta2 < 1.0
    beta_t = (beta2 - beta1) * jnp.arange(0, T + 1, dtype=jnp.float32) / T + beta1
    sqrt_beta_t = jnp.sqrt(beta_t)
    alpha_t = 1.0 - beta_t
    log_alpha_t = jnp.log(alpha_t)
    alphabar_t = jnp.exp(jnp.cumsum(log_alpha_t))
    sqrtab = jnp.sqrt(alphabar_t)
    oneover_sqrta = 1.0 / jnp.sqrt(alpha_t)
    sqrtmab = jnp.sqrt(1.0 - alphabar_t)
    mab_over_sqrtmab = (1.0 - alpha_t) / sqrtmab
    return dict(
        alpha_t=alpha_t, oneover_sqrta=oneover_sqrta, sqrt_beta_t=sqrt_beta_t,
        alphabar_t=alphabar_t, sqrtab=sqrtab, sqrtmab=sqrtmab,
        mab_over_sqrtmab=mab_over_sqrtmab,
    )


# ------------------------------- Pallas kernel -------------------------------
def ddpm_loss_kernel(x_ref, noise_ref, a_ref, m_ref, w_ref, cond_ref, out_ref):
    # Forward noising, recomputed per tile in f32 (keeps the grid axis
    # fully independent -> 'parallel' semantics / v7x megacore).
    x_t = a_ref[...] * x_ref[...] + m_ref[...] * noise_ref[...]      # (Bp, D) f32

    # Stand-in eps model for this output tile: bf16 MXU matmul, f32 accumulate.
    eps = jnp.dot(x_t.astype(jnp.bfloat16), w_ref[...],
                  preferred_element_type=jnp.float32)                # (Bp, tn)
    eps = eps + cond_ref[...]

    # Per-tile noise slice from the resident full copy (no duplicate stream).
    tn = eps.shape[-1]
    start = pl.multiple_of(pl.program_id(0) * tn, LANES)
    noise_tile = noise_ref[:, pl.ds(start, tn)]                      # (Bp, tn) f32

    diff = noise_tile - eps
    sq = diff * diff

    # Lane-group partial sums -> (Bp, 128); no cross-lane reduce, no SMEM RMW.
    part = sq[:, 0:LANES]
    for t in range(1, tn // LANES):
        part = part + sq[:, t * LANES:(t + 1) * LANES]
    out_ref[...] = part


# ------------------------------- wrapper (glue) -------------------------------
def ddpm_forward_loss(x, c, key, params, sched, n_T, tn=512):
    B, C, H, W = x.shape
    D = C * H * W
    assert D % tn == 0 and tn % LANES == 0

    # Pad batch to a full sublane group; padded rows contribute exactly 0.
    Bp = ((B + 7) // 8) * 8
    pad = Bp - B

    k_ts, k_noise = jax.random.split(key)
    _ts = jax.random.randint(k_ts, (B,), 1, n_T + 1)                  # [1, n_T]
    noise = jax.random.normal(k_noise, x.shape, dtype=jnp.float32)

    a = sched["sqrtab"][_ts][:, None].astype(jnp.float32)             # (B, 1)
    m = sched["sqrtmab"][_ts][:, None].astype(jnp.float32)            # (B, 1)

    x_flat = x.reshape(B, D).astype(jnp.float32)
    noise_flat = noise.reshape(B, D)

    # Conditioning term of the stand-in model (tiny gathers kept in plain JAX).
    cond = (params["ctx_emb"][c] + params["t_emb"][_ts]
            + params["bias"][None, :]).astype(jnp.float32)

    def pad_rows(arr):
        return jnp.pad(arr, ((0, pad), (0, 0)))

    x_p, noise_p = pad_rows(x_flat), pad_rows(noise_flat)
    a_p, m_p, cond_p = pad_rows(a), pad_rows(m), pad_rows(cond)

    w_bf16 = params["w"].astype(jnp.bfloat16)

    num_tiles = D // tn
    partials = pl.pallas_call(
        ddpm_loss_kernel,
        out_shape=jax.ShapeDtypeStruct((num_tiles * Bp, LANES), jnp.float32),
        grid_spec=pltpu.PrefetchScalarGridSpec(
            num_scalar_prefetch=0,
            grid=(num_tiles,),
            in_specs=[
                pl.BlockSpec((Bp, D), lambda j: (0, 0)),    # x (resident)
                pl.BlockSpec((Bp, D), lambda j: (0, 0)),    # noise (resident)
                pl.BlockSpec((Bp, 1), lambda j: (0, 0)),    # sqrtab[_ts]
                pl.BlockSpec((Bp, 1), lambda j: (0, 0)),    # sqrtmab[_ts]
                pl.BlockSpec((D, tn), lambda j: (0, j)),    # W column tile (bf16)
                pl.BlockSpec((Bp, tn), lambda j: (0, j)),   # cond tile
            ],
            out_specs=pl.BlockSpec((Bp, LANES), lambda j: (j, 0)),
        ),
        compiler_params=pltpu.CompilerParams(dimension_semantics=("parallel",)),
    )(x_p, noise_p, a_p, m_p, w_bf16, cond_p)

    loss = jnp.sum(partials) / jnp.float32(B * D)
    return loss, _ts, noise_flat, a, m, cond


# --------------------------------- main ---------------------------------
if __name__ == "__main__":
    B, C, H, W = 2, 4, 16, 16
    D = C * H * W
    n_T = 50
    n_classes = 10

    root = jax.random.PRNGKey(0)
    k_x, k_c, k_w, k_ctx, k_temb, k_bias, k_fwd = jax.random.split(root, 7)

    x = jax.random.normal(k_x, (B, C, H, W), dtype=jnp.float32)
    c = jax.random.randint(k_c, (B,), 0, n_classes)

    # Deterministic synthetic parameters for the stand-in eps model.
    params = dict(
        w=jax.random.normal(k_w, (D, D), dtype=jnp.float32) / jnp.sqrt(jnp.float32(D)),
        ctx_emb=0.1 * jax.random.normal(k_ctx, (n_classes, D), dtype=jnp.float32),
        t_emb=0.1 * jax.random.normal(k_temb, (n_T + 1, D), dtype=jnp.float32),
        bias=0.01 * jax.random.normal(k_bias, (D,), dtype=jnp.float32),
    )

    sched = ddpm_schedules(1e-4, 0.02, n_T)

    loss, _ts, noise_flat, a, m, cond = ddpm_forward_loss(
        x, c, k_fwd, params, sched, n_T, tn=512
    )
    loss = jax.block_until_ready(loss)

    # Pure-JAX reference of the same forward pass (same bf16 weight precision).
    x_flat = x.reshape(B, D)
    x_t = a * x_flat + m * noise_flat
    eps_ref = jnp.dot(x_t.astype(jnp.bfloat16), params["w"].astype(jnp.bfloat16),
                      preferred_element_type=jnp.float32) + cond
    ref_loss = jnp.mean((noise_flat - eps_ref) ** 2)

    assert np.isfinite(float(loss))
    np.testing.assert_allclose(float(loss), float(ref_loss), rtol=1e-2, atol=1e-4)

    print("KERNEL_OK")
</pallas_src>

<mosaic_0001>
module attributes {stable_mosaic.version = 11 : i64} {
  func.func @ddpm_loss_kernel(%arg0: i32, %arg1: memref<8x1024xf32, #tpu.memory_space<vmem>>, %arg2: memref<8x1024xf32, #tpu.memory_space<vmem>>, %arg3: memref<8x1xf32, #tpu.memory_space<vmem>>, %arg4: memref<8x1xf32, #tpu.memory_space<vmem>>, %arg5: memref<1024x512xbf16, #tpu.memory_space<vmem>>, %arg6: memref<8x512xf32, #tpu.memory_space<vmem>>, %arg7: memref<8x128xf32, #tpu.memory_space<vmem>>) attributes {dimension_semantics = [#tpu.dimension_semantics<parallel>], iteration_bounds = array<i64: 2>, scalar_prefetch = 0 : i64, scratch_operands = 0 : i64, tpu.core_type = #tpu.core_type<tc>, window_params = [{pipeline_mode = #tpu.pipeline_mode<synchronous>, transform_indices = @transform_0, window_bounds = array<i64: 8, 1024>}, {pipeline_mode = #tpu.pipeline_mode<synchronous>, transform_indices = @transform_1, window_bounds = array<i64: 8, 1024>}, {pipeline_mode = #tpu.pipeline_mode<synchronous>, transform_indices = @transform_2, window_bounds = array<i64: 8, 1>}, {pipeline_mode = #tpu.pipeline_mode<synchronous>, transform_indices = @transform_3, window_bounds = array<i64: 8, 1>}, {transform_indices = @transform_4, window_bounds = array<i64: 1024, 512>}, {transform_indices = @transform_5, window_bounds = array<i64: 8, 512>}, {transform_indices = @transform_6, window_bounds = array<i64: 8, 128>}]} {
    %c0 = arith.constant 0 : index
    %c0_0 = arith.constant 0 : index
    %0 = vector.load %arg3[%c0, %c0_0] : memref<8x1xf32, #tpu.memory_space<vmem>>, vector<8x1xf32>
    %c0_1 = arith.constant 0 : index
    %c0_2 = arith.constant 0 : index
    %1 = vector.load %arg1[%c0_1, %c0_2] : memref<8x1024xf32, #tpu.memory_space<vmem>>, vector<8x1024xf32>
    %2 = vector.broadcast %0 : vector<8x1xf32> to vector<8x1024xf32>
    %3 = arith.mulf %2, %1 : vector<8x1024xf32>
    %c0_3 = arith.constant 0 : index
    %c0_4 = arith.constant 0 : index
    %4 = vector.load %arg4[%c0_3, %c0_4] : memref<8x1xf32, #tpu.memory_space<vmem>>, vector<8x1xf32>
    %c0_5 = arith.constant 0 : index
    %c0_6 = arith.constant 0 : index
    %5 = vector.load %arg2[%c0_5, %c0_6] : memref<8x1024xf32, #tpu.memory_space<vmem>>, vector<8x1024xf32>
    %6 = vector.broadcast %4 : vector<8x1xf32> to vector<8x1024xf32>
    %7 = arith.mulf %6, %5 : vector<8x1024xf32>
    %8 = arith.addf %3, %7 : vector<8x1024xf32>
    %9 = arith.truncf %8 : vector<8x1024xf32> to vector<8x1024xbf16>
    %c0_7 = arith.constant 0 : index
    %c0_8 = arith.constant 0 : index
    %10 = vector.load %arg5[%c0_7, %c0_8] : memref<1024x512xbf16, #tpu.memory_space<vmem>>, vector<1024x512xbf16>
    %cst = arith.constant dense<0.000000e+00> : vector<8x512xf32>
    %11 = tpu.matmul %9, %10, %cst {dimension_numbers = #tpu.dot_dimension_numbers<[1], [0], [0], [1], [0, 0, 1, 1], [], []>} : vector<8x1024xbf16>, vector<1024x512xbf16>, vector<8x512xf32> -> vector<8x512xf32>
    %c0_9 = arith.constant 0 : index
    %c0_10 = arith.constant 0 : index
    %12 = vector.load %arg6[%c0_9, %c0_10] : memref<8x512xf32, #tpu.memory_space<vmem>>, vector<8x512xf32>
    %13 = arith.addf %11, %12 : vector<8x512xf32>
    %c512_i32 = arith.constant 512 : i32
    %14 = arith.muli %arg0, %c512_i32 : i32
    %15 = tpu.assume_multiple %14, 128 : i32
    %c0_11 = arith.constant 0 : index
    %16 = arith.index_cast %15 : i32 to index
    %17 = vector.load %arg2[%c0_11, %16] : memref<8x1024xf32, #tpu.memory_space<vmem>>, vector<8x512xf32>
    %18 = arith.subf %17, %13 : vector<8x512xf32>
    %19 = arith.mulf %18, %18 : vector<8x512xf32>
    %20 = vector.extract_strided_slice %19 {offsets = [0, 0], sizes = [8, 128], strides = [1, 1]} : vector<8x512xf32> to vector<8x128xf32>
    %21 = vector.extract_strided_slice %19 {offsets = [0, 128], sizes = [8, 128], strides = [1, 1]} : vector<8x512xf32> to vector<8x128xf32>
    %22 = arith.addf %20, %21 : vector<8x128xf32>
    %23 = vector.extract_strided_slice %19 {offsets = [0, 256], sizes = [8, 128], strides = [1, 1]} : vector<8x512xf32> to vector<8x128xf32>
    %24 = arith.addf %22, %23 : vector<8x128xf32>
    %25 = vector.extract_strided_slice %19 {offsets = [0, 384], sizes = [8, 128], strides = [1, 1]} : vector<8x512xf32> to vector<8x128xf32>
    %26 = arith.addf %24, %25 : vector<8x128xf32>
    %c0_12 = arith.constant 0 : index
    %c0_13 = arith.constant 0 : index
    %27 = vector.load %arg7[%c0_12, %c0_13] : memref<8x128xf32, #tpu.memory_space<vmem>>, vector<8x128xf32>
    tpu.vector_store %arg7[%c0_12, %c0_13], %26 {strides = array<i32>} : memref<8x128xf32, #tpu.memory_space<vmem>>, vector<8x128xf32>,
    return
  }
  func.func @transform_0(%arg0: i32) -> (i32, i32) {
    %c0_i32 = arith.constant 0 : i32
    %c0_i32_0 = arith.constant 0 : i32
    %c0_i32_1 = arith.constant 0 : i32
    return %c0_i32, %c0_i32_0 : i32, i32
  }
  func.func @transform_1(%arg0: i32) -> (i32, i32) {
    %c0_i32 = arith.constant 0 : i32
    %c0_i32_0 = arith.constant 0 : i32
    %c0_i32_1 = arith.constant 0 : i32
    return %c0_i32, %c0_i32_0 : i32, i32
  }
  func.func @transform_2(%arg0: i32) -> (i32, i32) {
    %c0_i32 = arith.constant 0 : i32
    %c0_i32_0 = arith.constant 0 : i32
    %c0_i32_1 = arith.constant 0 : i32
    return %c0_i32, %c0_i32_0 : i32, i32
  }
  func.func @transform_3(%arg0: i32) -> (i32, i32) {
    %c0_i32 = arith.constant 0 : i32
    %c0_i32_0 = arith.constant 0 : i32
    %c0_i32_1 = arith.constant 0 : i32
    return %c0_i32, %c0_i32_0 : i32, i32
  }
  func.func @transform_4(%arg0: i32) -> (i32, i32) {
    %c0_i32 = arith.constant 0 : i32
    %c0_i32_0 = arith.constant 0 : i32
    return %c0_i32, %arg0 : i32, i32
  }
  func.func @transform_5(%arg0: i32) -> (i32, i32) {
    %c0_i32 = arith.constant 0 : i32
    %c0_i32_0 = arith.constant 0 : i32
    return %c0_i32, %arg0 : i32, i32
  }
  func.func @transform_6(%arg0: i32) -> (i32, i32) {
    %c0_i32 = arith.constant 0 : i32
    %c0_i32_0 = arith.constant 0 : i32
    return %arg0, %c0_i32 : i32, i32
  }
}

</mosaic_0001>

<bundles_post_ra>
// kernel: tpu_custom_call.1
= control target key start
LH: loop header
LB: loop body
LE: loop exit
PB: predicated region body
PF: predicated region fallthrough
CT: control target
= control target key end

     0   :  { %s3974_s0 = inlined_call_operand.hbm [shape: f32[8,1024], index: 0, kind: input, shape index: {}]   ;;  %s3975_s1 = inlined_call_operand.hbm [shape: f32[8,1024], index: 1, kind: input, shape index: {}]   ;;  %s3976_s2 = inlined_call_operand.vmem [shape: f32[8,1], index: 2, kind: input, shape index: {}]   ;;  %s3977_s3 = inlined_call_operand.vmem [shape: f32[8,1], index: 3, kind: input, shape index: {}]   ;;  %s3978_s4 = inlined_call_operand.hbm [shape: bf16[1024,1024], index: 4, kind: input, shape index: {}]   ;;  %s3979_s5 = inlined_call_operand.hbm [shape: f32[8,1024], index: 5, kind: input, shape index: {}]   ;;  %s3980_s6 = inlined_call_operand.hbm [shape: f32[16,128], index: 6, kind: output, shape index: {}]  }
   0x1   :  { %3994 = sst [smem:[#allocation18_spill]] %s3974_s0 }
   0x2   :  { %3995 = sst [smem:[#allocation19_spill]] %s3978_s4 }
   0x3   :  { %11 = vsyncpa [#allocation3], 0 }
   0x4   :  { %12 = vsyncpa [#allocation6], 0 }
   0x5   :  { %13 = vsyncpa [#allocation4], 0 }
   0x6   :  { %15 = vsyncpa [#allocation4 + $0x1], 0  ;;  %s3410_s21 = smov 0   ;;  %s3412_s22 = smov 0  }
   0x7   :  { %s3414_s23 = smov 0   ;;  %s3416_s24 = smov 0  }
   0x8 LB: > { %3996 = sst [smem:[#allocation14_spill]] %s3352_s21  ;;  %s3431_s25 = sadd.s32 4294967295, %s3364_s24   ;;  %s3364_s24 = sphi %s3416_s24, %s4028_s24   ;;  %s3360_s23 = sphi %s3414_s23, %s4032_s23   ;;  %s3356_s22 = sphi %s3412_s22, %s4031_s22   ;;  %s3352_s21 = sphi %s3410_s21, %s4030_s21  }
   0x9   : > { %s2404_s26 = sadd.s32 4294967294, %s3364_s24   ;;  %s3435_s27 = sadd.s32 1, %s3364_s24  }
   0xa   : > { %3997 = sst [smem:[#allocation15_spill]] %s3435_s27  ;;  %s112_s28 = sadd.s32 1, %s3360_s23 }
   0xb   : > { %s109_s29 = ssub.s32 %s3364_s24, %s3435_s27  ;;  %p119_p0 = scmp.ne.s32.totalorder %s3360_s23, %s3356_s22 }
   0xc   : > { %p110_p1 = scmp.eq.s32.totalorder %s109_s29, 0  ;;  %p120_p2 = scmp.eq.s32.totalorder %s3364_s24, 0 }
   0xd   : > { %p125_p3 = scmp.ne.s32.totalorder %s3356_s22, %s3352_s21  ;;  %p3981_p4 = scmp.eq.s32.totalorder %s3431_s25, 0 }
   0xe   : > { %s3447_s30 = scalar_select %p110_p1, %s3360_s23, %s112_s28  }
   0xf   : > { %p3449_p5 = por %p120_p2, %p119_p0  ;;  %p3455_p6 = por %p3981_p4, %p125_p3 }
  0x10   : > { %3998 = sst [smem:[#allocation16_spill]] %s3447_s30  ;;  %p175_p7 = scmp.eq.s32.totalorder %s3431_s25, 1 }
  0x11   : > { %s4000_s8 = scalar_select %p3455_p6, 1, 0 }
  0x12   : > { %p181_p8 = scmp.eq.s32.totalorder %s2404_s26, 1  ;;  %p2405_p9 = scmp.ge.s32.totalorder %s3364_s24, 1 }
  0x13   : > { %p188_p10 = scmp.lt.s32.totalorder %s3364_s24, 3  ;;  %p3462_p11 = por %p175_p7, %p119_p0 }
  0x14   : > { %p3466_p12 = por %p181_p8, %p125_p3  ;;  %s3366_s12 = smov [#allocation2]  }
  0x15   : > { %s4001_s9 = scalar_select %p3462_p11, 1, 0 }
  0x16   : > { %s4002_s10 = scalar_select %p3466_p12, 1, 0 }
  0x17   : > { %p3470_p13 = pnand %p2405_p9, %p188_p10  ;;  %s201_s13 = sshll.u32 %s3366_s12, 4  ;;  %s202_s13 = int_to_ptr.vmem [resolvable:$true] %s201_s13 }
  0x18   : > { %4003 = sst [smem:[#allocation17_spill]] %s4002_s10  ;;  %p2747_p4 = scmp.lt.s32.totalorder %s3364_s24, 2 }
  0x19   : > { %s4004_s11 = scalar_select %p3470_p13, 1, 0 }
  0x1a   : > { %p2727_p2 = pneg %p3470_p13  ;;  %p4005_p0 = scmp.eq.s32.totalorder %s3431_s25, 0 }
  0x1b   : > { %s229_s15 = sand.u32 1, %s3364_s24   ;;  %p3487_p3 = pnand %p2747_p4, %p3449_p5 }
  0x1c   : > { %p3480_p7 = pnand %p2727_p2, %p4005_p0  ;;  %s3986_s17 = sand.u32 1, %s3360_s23  }
  0x1d   : > { %s4007_s16 = scalar_select %p3487_p3, 1, 0 }
  0x1e   : > { %s4008_s0 = sld [smem:[#allocation18_spill]]  ;;  %p3987_p9 = pneg %p3480_p7 }
  0x24   : > { %s3174_s20 = scalar_lea.hbm %s4008_s0, 1024 }
  0x25   : > { %p3175_p8 = scmp.ne.s32.totalorder %s4008_s0, %s3174_s20  ;;  %p3181_p4 = scmp.lt.u32.totalorder %s3174_s20, %s4008_s0 }
  0x27   : > { %p3177_p10 = pnand %p3987_p9, %p3175_p8 }
  0x29   : > { %p3178_p2 = pneg %p3177_p10 }
  0x2b   : > { %p3183_p5 = pnand %p3181_p4, %p3178_p2 }
  0x2d   : > { %3186 = shalt.err (!%p3183_p5)
}
  0x2e   : > { %s3187_s12 = scalar_lea.vmem %s202_s13, 1024  ;;  %p3195_p11 = scmp.lt.s32.totalorder %s202_s13, %s202_s13 }
  0x2f   : > { %p3188_p0 = scmp.ne.s32.totalorder %s202_s13, %s3187_s12  ;;  %p3196_p6 = scmp.lt.s32.totalorder %s3187_s12, %s3187_s12 }
  0x31   : > { %p3190_p1 = pnand %p3188_p0, %p3987_p9  ;;  %p3197_p13 = por %p3196_p6, %p3195_p11 }
  0x33   : > { %p3191_p12 = pneg %p3190_p1 }
  0x35   : > { %p3198_p3 = pnand %p3197_p13, %p3191_p12 }
  0x37   : > { %3201 = shalt.err (!%p3198_p3)
}
  0x38   : > { %2730 = dma.hbm_to_vmem [thread:$0]  (!%p3480_p7), %s4008_s0, 1024, %s202_s13, [#allocation3]  }
  0x39   : > { %s2409_s20 = sshll.u32 %s3986_s17, 11  ;;  %s2683_s26 = sshll.u32 %s3364_s24, 8 }
  0x3a   : > { %s4009_s4 = sld [smem:[#allocation19_spill]]  ;;  %s233_s12 = scalar_lea.vmem [#allocation7], %s2409_s20 }
  0x3b   : > { %s240_s30 = sshll.u32 %s233_s12, 4  ;;  %s3524_s18 = scalar_lea.sflag [#allocation3], %s229_s15  ;;  %s3522_s30 = int_to_ptr.vmem [resolvable:$true] %s240_s30 }
  0x3c   : > { %p4010_p11 = scmp.ne.s32.totalorder %s4007_s16, 0 }
  0x3e   : > { %p3992_p12 = pneg %p4010_p11 }
  0x40   : > { %s3520_s7 = scalar_lea.hbm %s4009_s4, %s2683_s26  ;;  %s3207_s28 = scalar_lea.hbm %s4009_s4, 65536 }
  0x41   : > { %s3202_s19 = scalar_lea.hbm %s3520_s7, 32768  ;;  %p3208_p3 = scmp.lt.u32.totalorder %s3520_s7, %s4009_s4 }
  0x42   : > { %p3203_p6 = scmp.ne.s32.totalorder %s3520_s7, %s3202_s19  ;;  %p3209_p8 = scmp.lt.u32.totalorder %s3207_s28, %s3202_s19 }
  0x43   : > { %p3211_p2 = scmp.lt.u32.totalorder %s3202_s19, %s3520_s7 }
  0x44   : > { %p3205_p13 = pnand %p3992_p12, %p3203_p6  ;;  %p3210_p10 = por %p3209_p8, %p3208_p3 }
  0x46   : > { %p3206_p1 = pneg %p3205_p13  ;;  %p3212_p4 = por %p3211_p2, %p3210_p10 }
  0x48   : > { %p3213_p5 = pnand %p3212_p4, %p3206_p1 }
  0x4a   : > { %3216 = shalt.err (!%p3213_p5)
}
  0x4b   : > { %s3217_s15 = scalar_lea.vmem %s3522_s30, 32768  ;;  %s3367_s20 = smov [#allocation7]  }
  0x4c   : > { %p3218_p0 = scmp.ne.s32.totalorder %s3522_s30, %s3217_s15  ;;  %s3222_s12 = sshll.u32 %s3367_s20, 4  ;;  %s3223_s12 = int_to_ptr.vmem [resolvable:$false] %s3222_s12 }
  0x4d   : > { %s3224_s17 = scalar_lea.vmem %s3223_s12, 65536  ;;  %p3225_p9 = scmp.lt.s32.totalorder %s3522_s30, %s3223_s12 }
  0x4e   : > { %p3220_p6 = pnand %p3218_p0, %p3992_p12  ;;  %p3226_p3 = scmp.lt.s32.totalorder %s3224_s17, %s3217_s15 }
  0x50   : > { %p3221_p13 = pneg %p3220_p6  ;;  %p3227_p8 = por %p3226_p3, %p3225_p9 }
  0x52   : > { %p3228_p10 = pnand %p3227_p8, %p3221_p13 }
  0x54   : > { %3231 = shalt.err (!%p3228_p10)
}
  0x55   : > { %s3368_s19 = smov 512   ;;  %s3369_s13 = smov 256  }
  0x56   : > { %s3370_s26 = smov 16   ;;  %s4011_s28 = sand.u32 1, %s3360_s23  }
  0x57   : > { %2737 = dma.hbm_to_vmem [thread:$0]  (!%p4010_p11), %s3520_s7, 32768, %s3522_s30, %s3524_s18, %s3368_s19, %s3369_s13, %s3370_s26  }
  0x58   : > { %s2412_s29 = sshll.u32 %s4011_s28, 5  ;;  %s3371_s20 = smov [#allocation5]  }
  0x59   : > { %s212_s12 = sshll.u32 %s3371_s20, 4  ;;  %s2684_s15 = sshll.u32 %s3364_s24, 9  ;;  %s213_s12 = int_to_ptr.vmem [resolvable:$true] %s212_s12 }
  0x5a   : > { %s3232_s4 = scalar_lea.hbm %s3975_s1, 1024  ;;  %p4012_p1 = pneg %p3480_p7 }
  0x5b   : > { %p3233_p9 = scmp.ne.s32.totalorder %s3975_s1, %s3232_s4  ;;  %p3239_p5 = scmp.lt.u32.totalorder %s3232_s4, %s3975_s1 }
  0x5d   : > { %p3235_p2 = pnand %p3233_p9, %p4012_p1 }
  0x5f   : > { %p3236_p4 = pneg %p3235_p2 }
  0x61   : > { %p3241_p0 = pnand %p3239_p5, %p3236_p4 }
  0x63   : > { %3244 = shalt.err (!%p3241_p0)
}
  0x64   : > { %s3245_s7 = scalar_lea.vmem %s213_s12, 1024  ;;  %p4013_p13 = pmov %p4012_p1 }
  0x65   : > { %p3246_p6 = scmp.ne.s32.totalorder %s213_s12, %s3245_s7  ;;  %p3253_p10 = scmp.lt.s32.totalorder %s213_s12, %s213_s12 }
  0x66   : > { %p3254_p12 = scmp.lt.s32.totalorder %s3245_s7, %s3245_s7 }
  0x67   : > { %p3248_p3 = pnand %p3246_p6, %p4013_p13 }
  0x68   : > { %p3255_p11 = por %p3254_p12, %p3253_p10 }
  0x69   : > { %p3249_p8 = pneg %p3248_p3 }
  0x6b   : > { %p3256_p1 = pnand %p3255_p11, %p3249_p8 }
  0x6d   : > { %3259 = shalt.err (!%p3256_p1)
}
  0x6e   : > { %2733 = dma.hbm_to_vmem [thread:$0]  (!%p3480_p7), %s3975_s1, 1024, %s213_s12, [#allocation6]  }
  0x6f   : > { %s3578_s10 = scalar_lea.hbm %s3979_s5, %s2684_s15  ;;  %s254_s19 = scalar_lea.vmem [#allocation8], %s2412_s29 }
  0x70   : > { %s262_s13 = sshll.u32 %s254_s19, 4  ;;  %s3260_s26 = scalar_lea.hbm %s3578_s10, 512  ;;  %s263_s13 = int_to_ptr.vmem [resolvable:$true] %s262_s13 }
  0x71   : > { %p3261_p11 = scmp.ne.s32.totalorder %s3578_s10, %s3260_s26  ;;  %p4014_p12 = scmp.ne.s32.totalorder %s4007_s16, 0 }
  0x72   : > { %s3265_s20 = scalar_lea.hbm %s3979_s5, 1024  ;;  %p3266_p7 = scmp.lt.u32.totalorder %s3578_s10, %s3979_s5 }
  0x73   : > { %p4015_p9 = pneg %p4014_p12  ;;  %p3267_p5 = scmp.lt.u32.totalorder %s3265_s20, %s3260_s26 }
  0x74   : > { %p3269_p6 = scmp.lt.u32.totalorder %s3260_s26, %s3578_s10 }
  0x75   : > { %p3263_p2 = pnand %p3261_p11, %p4015_p9  ;;  %p3268_p0 = por %p3267_p5, %p3266_p7 }
  0x77   : > { %p3264_p4 = pneg %p3263_p2  ;;  %p3270_p13 = por %p3269_p6, %p3268_p0 }
  0x79   : > { %p3271_p3 = pnand %p3270_p13, %p3264_p4 }
  0x7b   : > { %3274 = shalt.err (!%p3271_p3)
}
  0x7c   : > { %s3275_s29 = scalar_lea.vmem %s263_s13, 512  ;;  %p4016_p10 = pmov %p4015_p9 }
  0x7d   : > { %p3276_p8 = scmp.ne.s32.totalorder %s263_s13, %s3275_s29  ;;  %s3372_s17 = smov [#allocation8]  }
  0x7e   : > { %s3280_s30 = sshll.u32 %s3372_s17, 4  ;;  %s3281_s30 = int_to_ptr.vmem [resolvable:$false] %s3280_s30 }
  0x7f   : > { %p3278_p1 = pnand %p3276_p8, %p4016_p10  ;;  %s3282_s7 = scalar_lea.vmem %s3281_s30, 1024 }
  0x80   : > { %p3283_p9 = scmp.lt.s32.totalorder %s263_s13, %s3281_s30  ;;  %p3284_p2 = scmp.lt.s32.totalorder %s3282_s7, %s3275_s29 }
  0x81   : > { %p3279_p11 = pneg %p3278_p1 }
  0x82   : > { %p3285_p5 = por %p3284_p2, %p3283_p9 }
  0x84   : > { %p3286_p7 = pnand %p3285_p5, %p3279_p11 }
  0x86   : > { %3289 = shalt.err (!%p3286_p7)
}
  0x87   : > { %2740 = dma.hbm_to_vmem [thread:$0]  (!%p4014_p12), %s3578_s10, 512, %s263_s13, %s3524_s18  }
  0x88   : > { %p4017_p4 = scmp.ne.s32.totalorder %s4004_s11, 0 }
  0x89   : > { %p4018_p0 = scmp.eq.s32.totalorder (!%p4017_p4), %s3431_s25, 0 }
  0x8a   : > { %271 = sbr.rel (%p4017_p4) target bundleno = 726 (0x2d6), region = 44 }
  0x91   : > { %3335 = dma.done.wait (%p4018_p0), [#allocation3], 1024   ;;  %p4019_p6 = pmov %p4018_p0 }
  0x92   : > { %p4020_p13 = pmov %p4018_p0 }
  0x93   : > { %3337 = vsyncadd (%p4019_p6), [#allocation3], 4294966272 }
  0x94   : > { %3339 = dma.done.wait (%p4020_p13), [#allocation6], 1024   ;;  %p4021_p3 = pmov %p4018_p0 }
  0x95   : > { %s281_s16 = sand.u32 1, %s3431_s25   ;;  %s3612_s18 = sand.u32 1, %s3356_s22  }
  0x96   : > { %3341 = vsyncadd (%p4021_p3), [#allocation6], 4294966272  ;;  %s2418_s11 = sshll.u32 %s3612_s18, 11  ;;  %s282_s0 = scalar_lea.sflag [#allocation3], %s281_s16 }
  0x97   : > { %s3615_s27 = scalar_lea.vmem [#allocation7], %s2418_s11  ;;  %p4022_p12 = scmp.ne.s32.totalorder %s4000_s8, 0 }
  0x99   : > { %3343 = dma.done.wait (%p4022_p12), %s282_s0, 33280  }
  0x9a   : > { %3345 = vsyncadd (%p4022_p12), %s282_s0, 4294934016  ;;  %v3373_v0 = vmov 0   ;;  %v330_v1 = vld [vmem:[%s3976_s2] sm:$0xff]  ;;  %v2792_v4 = vld [vmem:[%s3615_s27 + $0xc] ss:$16 sps:$4 sm:$0xff]   ;;  %s2677_s8 = sshll.u32 %s3431_s25, 9 }
  0x9b   : > { %2789 = vset.pattern.permute.xlu0 %v3373_v0  ;;  %v352_v2 = vld [vmem:[%s3977_s3] sm:$0xff]  ;;  %v2795_v6 = vld [vmem:[%s3615_s27 + $0x8] ss:$16 sps:$4 sm:$0xff]   ;;  %2094 = vmatprep.subr.bf16.mxu1 %v2792_v4  ;;  %v2798_v8 = vld [vmem:[%s3615_s27 + $0x2c] ss:$16 sps:$4 sm:$0xff]   ;;  %s2259_s13 = sshra.s32 %s2677_s8, 7 }
  0x9c   : > { %341 = vperm.xlu0 %2789, %v330_v1   ;;  %v2790_v3 = vld [vmem:[%s3615_s27 + $0x4] ss:$16 sps:$4 sm:$0xff]   ;;  %v2794_v5 = vld [vmem:[%s3615_s27] ss:$16 sps:$4 sm:$0xff]   ;;  %2095 = vmatpush1.bf16.msra.mxu1 %v2795_v6  ;;  %v2801_v10 = vld [vmem:[%s3615_s27 + $0x28] ss:$16 sps:$4 sm:$0xff]  }
  0x9d   : > { %1930 = vmatprep.subr.bf16.mxu0 %v2790_v3  ;;  %v2796_v7 = vld [vmem:[%s3615_s27 + $0x24] ss:$16 sps:$4 sm:$0xff]   ;;  %v2800_v9 = vld [vmem:[%s3615_s27 + $0x20] ss:$16 sps:$4 sm:$0xff]   ;;  %2096 = vmatprep.subr.bf16.mxu1 %v2798_v8  ;;  %v2804_v12 = vld [vmem:[%s3615_s27 + $0x4c] ss:$16 sps:$4 sm:$0xff]  }
  0x9e   : > { %1931 = vmatpush1.bf16.msra.mxu0 %v2794_v5  ;;  %v2802_v11 = vld [vmem:[%s3615_s27 + $0x44] ss:$16 sps:$4 sm:$0xff]   ;;  %v2806_v13 = vld [vmem:[%s3615_s27 + $0x40] ss:$16 sps:$4 sm:$0xff]   ;;  %v2807_v14 = vld [vmem:[%s3615_s27 + $0x48] ss:$16 sps:$4 sm:$0xff]  }
  0x9f   : > { %1932 = vmatprep.subr.bf16.mxu0 %v2796_v7  ;;  %v2808_v15 = vld [vmem:[%s3615_s27 + $0x64] ss:$16 sps:$4 sm:$0xff]   ;;  %v2810_v16 = vld [vmem:[%s3615_s27 + $0x6c] ss:$16 sps:$4 sm:$0xff]   ;;  %v2812_v17 = vld [vmem:[%s3615_s27 + $0x60] ss:$16 sps:$4 sm:$0xff]  }
  0xa0   : > { %363 = vperm.xlu0 %2789, %v352_v2   ;;  %2097 = vmatpush1.bf16.msra.mxu1 %v2801_v10  ;;  %v2813_v18 = vld [vmem:[%s3615_s27 + $0x68] ss:$16 sps:$4 sm:$0xff]   ;;  %v2814_v19 = vld [vmem:[%s3615_s27 + $0x84] ss:$16 sps:$4 sm:$0xff]   ;;  %v2816_v20 = vld [vmem:[%s3615_s27 + $0x8c] ss:$16 sps:$4 sm:$0xff]  }
  0xa1   : > { %2098 = vmatprep.subr.bf16.mxu1 %v2804_v12  ;;  %v2818_v21 = vld [vmem:[%s3615_s27 + $0x80] ss:$16 sps:$4 sm:$0xff]   ;;  %v2819_v22 = vld [vmem:[%s3615_s27 + $0x88] ss:$16 sps:$4 sm:$0xff]   ;;  %v2820_v23 = vld [vmem:[%s3615_s27 + $0xa4] ss:$16 sps:$4 sm:$0xff]  }
  0xa2   : > { %1933 = vmatpush1.bf16.msra.mxu0 %v2800_v9  ;;  %v2822_v24 = vld [vmem:[%s3615_s27 + $0xac] ss:$16 sps:$4 sm:$0xff]   ;;  %v2824_v25 = vld [vmem:[%s3615_s27 + $0xa0] ss:$16 sps:$4 sm:$0xff]   ;;  %v2825_v26 = vld [vmem:[%s3615_s27 + $0xa8] ss:$16 sps:$4 sm:$0xff]  }
  0xa3   : > { %1934 = vmatprep.subr.bf16.mxu0 %v2802_v11  ;;  %v2826_v27 = vld [vmem:[%s3615_s27 + $0xc4] ss:$16 sps:$4 sm:$0xff]   ;;  %v2828_v28 = vld [vmem:[%s3615_s27 + $0xcc] ss:$16 sps:$4 sm:$0xff]   ;;  %v2830_v29 = vld [vmem:[%s3615_s27 + $0xc0] ss:$16 sps:$4 sm:$0xff]  }
  0xa4   : > { %2099 = vmatpush1.bf16.msra.mxu1 %v2807_v14  ;;  %v2831_v30 = vld [vmem:[%s3615_s27 + $0xc8] ss:$16 sps:$4 sm:$0xff]   ;;  %v2832_v31 = vld [vmem:[%s3615_s27 + $0xe4] ss:$16 sps:$4 sm:$0xff]   ;;  %v2834_v32 = vld [vmem:[%s3615_s27 + $0xec] ss:$16 sps:$4 sm:$0xff]  }
  0xa5   : > { %2100 = vmatprep.subr.bf16.mxu1 %v2810_v16  ;;  %v2836_v33 = vld [vmem:[%s3615_s27 + $0xe0] ss:$16 sps:$4 sm:$0xff]   ;;  %v2837_v34 = vld [vmem:[%s3615_s27 + $0xe8] ss:$16 sps:$4 sm:$0xff]   ;;  %v2838_v35 = vld [vmem:[%s3615_s27 + $0x104] ss:$16 sps:$4 sm:$0xff]  }
  0xa6   : > { %1935 = vmatpush1.bf16.msra.mxu0 %v2806_v13  ;;  %v2840_v36 = vld [vmem:[%s3615_s27 + $0x10c] ss:$16 sps:$4 sm:$0xff]   ;;  %v2842_v37 = vld [vmem:[%s3615_s27 + $0x100] ss:$16 sps:$4 sm:$0xff]   ;;  %v2843_v38 = vld [vmem:[%s3615_s27 + $0x108] ss:$16 sps:$4 sm:$0xff]  }
  0xa7   : > { %1936 = vmatprep.subr.bf16.mxu0 %v2808_v15  ;;  %v2844_v39 = vld [vmem:[%s3615_s27 + $0x124] ss:$16 sps:$4 sm:$0xff]   ;;  %v2846_v40 = vld [vmem:[%s3615_s27 + $0x12c] ss:$16 sps:$4 sm:$0xff]   ;;  %v2848_v41 = vld [vmem:[%s3615_s27 + $0x120] ss:$16 sps:$4 sm:$0xff]  }
  0xa8   : > { %2101 = vmatpush1.bf16.msra.mxu1 %v2813_v18  ;;  %v2849_v42 = vld [vmem:[%s3615_s27 + $0x128] ss:$16 sps:$4 sm:$0xff]   ;;  %v2850_v43 = vld [vmem:[%s3615_s27 + $0x144] ss:$16 sps:$4 sm:$0xff]   ;;  %v2852_v44 = vld [vmem:[%s3615_s27 + $0x14c] ss:$16 sps:$4 sm:$0xff]  }
  0xa9   : > { %2102 = vmatprep.subr.bf16.mxu1 %v2816_v20  ;;  %v2854_v45 = vld [vmem:[%s3615_s27 + $0x140] ss:$16 sps:$4 sm:$0xff]   ;;  %v2855_v46 = vld [vmem:[%s3615_s27 + $0x148] ss:$16 sps:$4 sm:$0xff]   ;;  %v2856_v47 = vld [vmem:[%s3615_s27 + $0x164] ss:$16 sps:$4 sm:$0xff]  }
  0xaa   : > { %1937 = vmatpush1.bf16.msra.mxu0 %v2812_v17  ;;  %v2858_v48 = vld [vmem:[%s3615_s27 + $0x16c] ss:$16 sps:$4 sm:$0xff]   ;;  %v2860_v49 = vld [vmem:[%s3615_s27 + $0x160] ss:$16 sps:$4 sm:$0xff]   ;;  %v2861_v50 = vld [vmem:[%s3615_s27 + $0x168] ss:$16 sps:$4 sm:$0xff]  }
  0xab   : > { %1938 = vmatprep.subr.bf16.mxu0 %v2814_v19  ;;  %v2862_v51 = vld [vmem:[%s3615_s27 + $0x184] ss:$16 sps:$4 sm:$0xff]   ;;  %v2864_v52 = vld [vmem:[%s3615_s27 + $0x18c] ss:$16 sps:$4 sm:$0xff]   ;;  %v2866_v53 = vld [vmem:[%s3615_s27 + $0x180] ss:$16 sps:$4 sm:$0xff]  }
  0xac   : > { %2103 = vmatpush1.bf16.msra.mxu1 %v2819_v22  ;;  %v2867_v54 = vld [vmem:[%s3615_s27 + $0x188] ss:$16 sps:$4 sm:$0xff]   ;;  %v2868_v55 = vld [vmem:[%s3615_s27 + $0x1a4] ss:$16 sps:$4 sm:$0xff]   ;;  %v2870_v56 = vld [vmem:[%s3615_s27 + $0x1ac] ss:$16 sps:$4 sm:$0xff]  }
  0xad   : > { %2104 = vmatprep.subr.bf16.mxu1 %v2822_v24  ;;  %v2872_v57 = vld [vmem:[%s3615_s27 + $0x1a0] ss:$16 sps:$4 sm:$0xff]   ;;  %v2873_v58 = vld [vmem:[%s3615_s27 + $0x1a8] ss:$16 sps:$4 sm:$0xff]   ;;  %v2874_v59 = vld [vmem:[%s3615_s27 + $0x1c4] ss:$16 sps:$4 sm:$0xff]  }
  0xae   : > { %1939 = vmatpush1.bf16.msra.mxu0 %v2818_v21  ;;  %v2876_v60 = vld [vmem:[%s3615_s27 + $0x1cc] ss:$16 sps:$4 sm:$0xff]   ;;  %v2878_v61 = vld [vmem:[%s3615_s27 + $0x1c0] ss:$16 sps:$4 sm:$0xff]   ;;  %v2879_v62 = vld [vmem:[%s3615_s27 + $0x1c8] ss:$16 sps:$4 sm:$0xff]  }
  0xaf   : > { %1940 = vmatprep.subr.bf16.mxu0 %v2820_v23  ;;  %v2880_v63 = vld [vmem:[%s3615_s27 + $0x1e4] ss:$16 sps:$4 sm:$0xff]   ;;  %v2882_v0 = vld [vmem:[%s3615_s27 + $0x1ec] ss:$16 sps:$4 sm:$0xff]   ;;  %v2884_v1 = vld [vmem:[%s3615_s27 + $0x1e0] ss:$16 sps:$4 sm:$0xff]  }
  0xb0   : > { %2105 = vmatpush1.bf16.msra.mxu1 %v2825_v26  ;;  %v2885_v2 = vld [vmem:[%s3615_s27 + $0x1e8] ss:$16 sps:$4 sm:$0xff]   ;;  %v2888_v3 = vld [vmem:[%s3615_s27 + $0x204] ss:$16 sps:$4 sm:$0xff]   ;;  %v2891_v4 = vld [vmem:[%s3615_s27 + $0x20c] ss:$16 sps:$4 sm:$0xff]  }
  0xb1   : > { %2106 = vmatprep.subr.bf16.mxu1 %v2828_v28  ;;  %v332_v5 = vld [vmem:[#allocation2 + $0x8] sm:$0xff]  ;;  %v331_v6 = vld [vmem:[#allocation2] sm:$0xff]  ;;  %v334_v7 = vld [vmem:[#allocation2 + $0x18] sm:$0xff]  ;;  %s2419_s26 = sshll.u32 %s3612_s18, 5  ;;  %s2678_s14 = sshll.u32 %s2259_s13, 3 }
  0xb2   : > { %1941 = vmatpush1.bf16.msra.mxu0 %v2824_v25  ;;  %v333_v8 = vld [vmem:[#allocation2 + $0x10] sm:$0xff]  ;;  %v354_v10 = vld [vmem:[#allocation5 + $0x8] sm:$0xff]  ;;  %v353_v11 = vld [vmem:[#allocation5] sm:$0xff]  ;;  %s294_s28 = scalar_lea.vmem [#allocation8], %s2419_s26  ;;  %s2262_s20 = scalar_lea.vmem [#allocation5], %s2678_s14 }
  0xb3   : > { %1942 = vmatprep.subr.bf16.mxu0 %v2826_v27  ;;  %v336_v12 = vld [vmem:[#allocation2 + $0x28] sm:$0xff]  ;;  %v335_v13 = vld [vmem:[#allocation2 + $0x20] sm:$0xff]  ;;  %v356_v14 = vld [vmem:[#allocation5 + $0x18] sm:$0xff]  ;;  %s2420_s12 = sshll.u32 %s3612_s18, 3  ;;  %s2680_s15 = sshll.u32 %s3431_s25, 7 }
  0xb4   : > { %2107 = vmatpush1.bf16.msra.mxu1 %v2831_v30  ;;  %v355_v15 = vld [vmem:[#allocation5 + $0x10] sm:$0xff]  ;;  %v358_v16 = vld [vmem:[#allocation5 + $0x28] sm:$0xff]  ;;  %v357_v19 = vld [vmem:[#allocation5 + $0x20] sm:$0xff]  ;;  %s327_s29 = scalar_lea.vmem [#allocation9], %s2420_s12  ;;  %s3930_s16 = scalar_lea.hbm %s3980_s6, %s2680_s15 }
  0xb5   : > { %2108 = vmatprep.subr.bf16.mxu1 %v2834_v32  ;;  %v338_v25 = vld [vmem:[#allocation2 + $0x38] sm:$0xff]  ;;  %s2293_s17 = sshll.u32 %s327_s29, 4  ;;  %s2280_s11 = scalar_lea.sflag [#allocation4], %s3612_s18  ;;  %s3932_s17 = int_to_ptr.vmem [resolvable:$true] %s2293_s17 }
  0xb6   : > { %1943 = vmatpush1.bf16.msra.mxu0 %v2830_v29  ;;  %v360_v30 = vld [vmem:[#allocation5 + $0x38] sm:$0xff]  ;;  %s3290_s0 = scalar_lea.vmem %s3932_s17, 128  ;;  %p4023_p10 = scmp.ne.s32.totalorder %s4001_s9, 0 }
  0xb7   : > { %1944 = vmatprep.subr.bf16.mxu0 %v2832_v31  ;;  %p3291_p8 = scmp.ne.s32.totalorder %s3932_s17, %s3290_s0  ;;  %s3374_s25 = smov [#allocation9]  }
  0xb8   : > { %2109 = vmatpush1.bf16.msra.mxu1 %v2837_v34 }
  0xb9   : > { %2110 = vmatprep.subr.bf16.mxu1 %v2840_v36  ;;  %v2886_v36 = vld [vmem:[%s3615_s27 + $0x200] ss:$16 sps:$4 sm:$0xff]   ;;  %p3292_p1 = pnand %p3291_p8, %p4023_p10 }
  0xba   : > { %1945 = vmatpush1.bf16.msra.mxu0 %v2836_v33 }
  0xbb   : > { %1946 = vmatprep.subr.bf16.mxu0 %v2838_v35  ;;  %p3293_p11 = pneg %p3292_p1 }
  0xbc   : > { %2111 = vmatpush1.bf16.msra.mxu1 %v2843_v38 }
  0xbd   : > { %2112 = vmatprep.subr.bf16.mxu1 %v2846_v40 }
  0xbe   : > { %1947 = vmatpush1.bf16.msra.mxu0 %v2842_v37  ;;  %v2889_v37 = vld [vmem:[%s3615_s27 + $0x208] ss:$16 sps:$4 sm:$0xff]  }
  0xbf   : > { %1948 = vmatprep.subr.bf16.mxu0 %v2844_v39 }
  0xc0   : > { %2113 = vmatpush1.bf16.msra.mxu1 %v2849_v42 }
  0xc1   : > { %2114 = vmatprep.subr.bf16.mxu1 %v2852_v44 }
  0xc2   : > { %1949 = vmatpush1.bf16.msra.mxu0 %v2848_v41 }
  0xc3   : > { %1950 = vmatprep.subr.bf16.mxu0 %v2850_v43 }
  0xc4   : > { %2115 = vmatpush1.bf16.msra.mxu1 %v2855_v46  ;;  %v2894_v46 = vld [vmem:[%s3615_s27 + $0x224] ss:$16 sps:$4 sm:$0xff]  }
  0xc5   : > { %2116 = vmatprep.subr.bf16.mxu1 %v2858_v48  ;;  %v2895_v48 = vld [vmem:[%s3615_s27 + $0x228] ss:$16 sps:$4 sm:$0xff]  }
  0xc6   : > { %1951 = vmatpush1.bf16.msra.mxu0 %v2854_v45 }
  0xc7   : > { %1952 = vmatprep.subr.bf16.mxu0 %v2856_v47  ;;  %v2892_v47 = vld [vmem:[%s3615_s27 + $0x220] ss:$16 sps:$4 sm:$0xff]  }
  0xc8   : > { %2117 = vmatpush1.bf16.msra.mxu1 %v2861_v50 }
  0xc9   : > { %2118 = vmatprep.subr.bf16.mxu1 %v2864_v52  ;;  %v2903_v52 = vld [vmem:[%s3615_s27 + $0x24c] ss:$16 sps:$4 sm:$0xff]  }
  0xca   : > { %1953 = vmatpush1.bf16.msra.mxu0 %v2860_v49  ;;  %v2897_v49 = vld [vmem:[%s3615_s27 + $0x22c] ss:$16 sps:$4 sm:$0xff]  }
  0xcb   : > { %1954 = vmatprep.subr.bf16.mxu0 %v2862_v51  ;;  %v2900_v51 = vld [vmem:[%s3615_s27 + $0x244] ss:$16 sps:$4 sm:$0xff]  }
  0xcc   : > { %2119 = vmatpush1.bf16.msra.mxu1 %v2867_v54  ;;  %v2901_v54 = vld [vmem:[%s3615_s27 + $0x248] ss:$16 sps:$4 sm:$0xff]  }
  0xcd   : > { %2120 = vmatprep.subr.bf16.mxu1 %v2870_v56  ;;  %v2909_v56 = vld [vmem:[%s3615_s27 + $0x26c] ss:$16 sps:$4 sm:$0xff]  }
  0xce   : > { %1955 = vmatpush1.bf16.msra.mxu0 %v2866_v53  ;;  %v2898_v53 = vld [vmem:[%s3615_s27 + $0x240] ss:$16 sps:$4 sm:$0xff]  }
  0xcf   : > { %1956 = vmatprep.subr.bf16.mxu0 %v2868_v55  ;;  %v2906_v55 = vld [vmem:[%s3615_s27 + $0x264] ss:$16 sps:$4 sm:$0xff]  }
  0xd0   : > { %2121 = vmatpush1.bf16.msra.mxu1 %v2873_v58  ;;  %v2907_v58 = vld [vmem:[%s3615_s27 + $0x268] ss:$16 sps:$4 sm:$0xff]  }
  0xd1   : > { %2122 = vmatprep.subr.bf16.mxu1 %v2876_v60  ;;  %v2915_v60 = vld [vmem:[%s3615_s27 + $0x28c] ss:$16 sps:$4 sm:$0xff]  }
  0xd2   : > { %1957 = vmatpush1.bf16.msra.mxu0 %v2872_v57  ;;  %v2904_v57 = vld [vmem:[%s3615_s27 + $0x260] ss:$16 sps:$4 sm:$0xff]  }
  0xd3   : > { %1958 = vmatprep.subr.bf16.mxu0 %v2874_v59  ;;  %v2912_v59 = vld [vmem:[%s3615_s27 + $0x284] ss:$16 sps:$4 sm:$0xff]  }
  0xd4   : > { %2123 = vmatpush1.bf16.msra.mxu1 %v2879_v62  ;;  %v2913_v62 = vld [vmem:[%s3615_s27 + $0x288] ss:$16 sps:$4 sm:$0xff]  }
  0xd5   : > { %2124 = vmatprep.subr.bf16.mxu1 %v2882_v0  ;;  %v2921_v0 = vld [vmem:[%s3615_s27 + $0x2ac] ss:$16 sps:$4 sm:$0xff]  }
  0xd6   : > { %1959 = vmatpush1.bf16.msra.mxu0 %v2878_v61  ;;  %v2910_v61 = vld [vmem:[%s3615_s27 + $0x280] ss:$16 sps:$4 sm:$0xff]  }
  0xd7   : > { %1960 = vmatprep.subr.bf16.mxu0 %v2880_v63  ;;  %v2918_v63 = vld [vmem:[%s3615_s27 + $0x2a4] ss:$16 sps:$4 sm:$0xff]  }
  0xd8   : > { %2125 = vmatpush1.bf16.msra.mxu1 %v2885_v2  ;;  %v2919_v2 = vld [vmem:[%s3615_s27 + $0x2a8] ss:$16 sps:$4 sm:$0xff]  }
  0xd9   : > { %2135 = vmatprep.subr.bf16.mxu1 %v2891_v4  ;;  %v2927_v4 = vld [vmem:[%s3615_s27 + $0x2cc] ss:$16 sps:$4 sm:$0xff]  }
  0xda   : > { %1961 = vmatpush1.bf16.msra.mxu0 %v2884_v1  ;;  %v2916_v1 = vld [vmem:[%s3615_s27 + $0x2a0] ss:$16 sps:$4 sm:$0xff]  }
  0xdb   : > { %1971 = vmatprep.subr.bf16.mxu0 %v2888_v3  ;;  %v2924_v3 = vld [vmem:[%s3615_s27 + $0x2c4] ss:$16 sps:$4 sm:$0xff]  }
 0x11b   : > { %v3693_v9 = vpop.permute.xlu0 %341 }
 0x11c   : > { %v345_v17 = vmul.f32 %v3693_v9, %v332_v5  ;;  %v344_v18 = vmul.f32 %v3693_v9, %v331_v6  ;;  %v347_v21 = vmul.f32 %v3693_v9, %v334_v7  ;;  %v346_v22 = vmul.f32 %v3693_v9, %v333_v8  ;;  %v2922_v5 = vld [vmem:[%s3615_s27 + $0x2c0] ss:$16 sps:$4 sm:$0xff]   ;;  %v2925_v6 = vld [vmem:[%s3615_s27 + $0x2c8] ss:$16 sps:$4 sm:$0xff]   ;;  %v2930_v7 = vld [vmem:[%s3615_s27 + $0x2e4] ss:$16 sps:$4 sm:$0xff]  }
 0x11d   : > { %v349_v23 = vmul.f32 %v3693_v9, %v336_v12  ;;  %v348_v24 = vmul.f32 %v3693_v9, %v335_v13  ;;  %v351_v33 = vmul.f32 %v3693_v9, %v338_v25  ;;  %v2933_v8 = vld [vmem:[%s3615_s27 + $0x2ec] ss:$16 sps:$4 sm:$0xff]   ;;  %v2928_v12 = vld [vmem:[%s3615_s27 + $0x2e0] ss:$16 sps:$4 sm:$0xff]   ;;  %v2931_v13 = vld [vmem:[%s3615_s27 + $0x2e8] ss:$16 sps:$4 sm:$0xff]  }
 0x11e   : > { %v2951_v25 = vld [vmem:[%s3615_s27 + $0x34c] ss:$16 sps:$4 sm:$0xff]  }
 0x11f   : > { %v3697_v20 = vpop.permute.xlu0 %363 }
 0x120   : > { %v367_v26 = vmul.f32 %v3697_v20, %v354_v10  ;;  %v366_v27 = vmul.f32 %v3697_v20, %v353_v11  ;;  %v369_v28 = vmul.f32 %v3697_v20, %v356_v14  ;;  %v368_v29 = vmul.f32 %v3697_v20, %v355_v15  ;;  %v337_v10 = vld [vmem:[#allocation2 + $0x30] sm:$0xff] }
 0x121   : > { %v371_v31 = vmul.f32 %v3697_v20, %v358_v16  ;;  %v370_v32 = vmul.f32 %v3697_v20, %v357_v19  ;;  %v373_v34 = vmul.f32 %v3697_v20, %v360_v30  ;;  %v359_v11 = vld [vmem:[#allocation5 + $0x30] sm:$0xff]  ;;  %v350_v14 = vmul.f32 %v3693_v9, %v337_v10  ;;  %v3017_v10 = vld [vmem:[%s3615_s27 + $0x4ac] ss:$16 sps:$4 sm:$0xff]  }
 0x122   : > { %v375_v35 = vadd.f32 %v367_v26, %v345_v17  ;;  %v374_v38 = vadd.f32 %v366_v27, %v344_v18  ;;  %v3713_v39 = vadd.f32 %v368_v29, %v346_v22  ;;  %v377_v40 = vadd.f32 %v369_v28, %v347_v21  ;;  %v2936_v16 = vld [vmem:[%s3615_s27 + $0x304] ss:$16 sps:$4 sm:$0xff]   ;;  %v2939_v17 = vld [vmem:[%s3615_s27 + $0x30c] ss:$16 sps:$4 sm:$0xff]   ;;  %v2934_v19 = vld [vmem:[%s3615_s27 + $0x300] ss:$16 sps:$4 sm:$0xff]  }
 0x123   : > { %v3715_v41 = vadd.f32 %v371_v31, %v349_v23  ;;  %v3717_v42 = vadd.f32 %v370_v32, %v348_v24  ;;  %v3719_v43 = vadd.f32 %v373_v34, %v351_v33  ;;  %v372_v15 = vmul.f32 %v3697_v20, %v359_v11  ;;  %v2937_v21 = vld [vmem:[%s3615_s27 + $0x308] ss:$16 sps:$4 sm:$0xff]   ;;  %v2942_v9 = vld [vmem:[%s3615_s27 + $0x324] ss:$16 sps:$4 sm:$0xff]   ;;  %v2945_v20 = vld [vmem:[%s3615_s27 + $0x32c] ss:$16 sps:$4 sm:$0xff]  }
 0x124   : > { %v383_v44 = vpack.c.bf16 %v375_v35, %v375_v35  ;;  %v382_v45 = vpack.c.bf16 %v374_v38, %v374_v38  ;;  %v385_v50 = vpack.c.bf16 %v377_v40, %v377_v40  ;;  %v2940_v22 = vld [vmem:[%s3615_s27 + $0x320] ss:$16 sps:$4 sm:$0xff]   ;;  %v2943_v23 = vld [vmem:[%s3615_s27 + $0x328] ss:$16 sps:$4 sm:$0xff]   ;;  %v2948_v24 = vld [vmem:[%s3615_s27 + $0x344] ss:$16 sps:$4 sm:$0xff]  }
 0x125   : > { %v3753_v18 = vadd.f32 %v372_v15, %v350_v14  ;;  %v2946_v26 = vld [vmem:[%s3615_s27 + $0x340] ss:$16 sps:$4 sm:$0xff]   ;;  %v2949_v27 = vld [vmem:[%s3615_s27 + $0x348] ss:$16 sps:$4 sm:$0xff]   ;;  %v2954_v28 = vld [vmem:[%s3615_s27 + $0x364] ss:$16 sps:$4 sm:$0xff]  }
 0x126   : > { %1962 = vmatprep.mubr.bf16.mxu0 %v383_v44  ;;  %2126 = vmatprep.mubr.bf16.mxu1 %v383_v44  ;;  %v2957_v29 = vld [vmem:[%s3615_s27 + $0x36c] ss:$16 sps:$4 sm:$0xff]   ;;  %v2952_v30 = vld [vmem:[%s3615_s27 + $0x360] ss:$16 sps:$4 sm:$0xff]   ;;  %v2955_v31 = vld [vmem:[%s3615_s27 + $0x368] ss:$16 sps:$4 sm:$0xff]  }
 0x127   : > { %1963 = vmatmul.mubr.bf16.vlgmr.msra.gmra.mrb[0].mxu0 %v382_v45  ;;  %2127 = vmatmul.mubr.bf16.vlgmr.msra.gmra.mrb[0].mxu1 %v382_v45  ;;  %v2960_v32 = vld [vmem:[%s3615_s27 + $0x384] ss:$16 sps:$4 sm:$0xff]   ;;  %v2963_v33 = vld [vmem:[%s3615_s27 + $0x38c] ss:$16 sps:$4 sm:$0xff]   ;;  %v2958_v34 = vld [vmem:[%s3615_s27 + $0x380] ss:$16 sps:$4 sm:$0xff]  }
 0x128   : > { %1972 = vmatpush1.bf16.msra.mxu0 %v2886_v36  ;;  %2136 = vmatpush1.bf16.msra.mxu1 %v2889_v37  ;;  %v2961_v35 = vld [vmem:[%s3615_s27 + $0x388] ss:$16 sps:$4 sm:$0xff]   ;;  %v2966_v36 = vld [vmem:[%s3615_s27 + $0x3a4] ss:$16 sps:$4 sm:$0xff]   ;;  %v2969_v37 = vld [vmem:[%s3615_s27 + $0x3ac] ss:$16 sps:$4 sm:$0xff]  }
 0x129   : > { %2003 = vmatprep.mubr.bf16.mxu0 %v385_v50  ;;  %2167 = vmatprep.mubr.bf16.mxu1 %v385_v50  ;;  %v2964_v38 = vld [vmem:[%s3615_s27 + $0x3a0] ss:$16 sps:$4 sm:$0xff]   ;;  %v2967_v40 = vld [vmem:[%s3615_s27 + $0x3a8] ss:$16 sps:$4 sm:$0xff]   ;;  %v2972_v44 = vld [vmem:[%s3615_s27 + $0x3c4] ss:$16 sps:$4 sm:$0xff]  }
 0x12a   : > { %1973 = vmatprep.subr.bf16.mxu0 %v2894_v46  ;;  %2137 = vmatprep.subr.bf16.mxu1 %v2897_v49  ;;  %v2975_v45 = vld [vmem:[%s3615_s27 + $0x3cc] ss:$16 sps:$4 sm:$0xff]   ;;  %v2970_v46 = vld [vmem:[%s3615_s27 + $0x3c0] ss:$16 sps:$4 sm:$0xff]  }
 0x12b   : > { %v2981_v49 = vld [vmem:[%s3615_s27 + $0x3ec] ss:$16 sps:$4 sm:$0xff]   ;;  %v2976_v50 = vld [vmem:[%s3615_s27 + $0x3e0] ss:$16 sps:$4 sm:$0xff]  }
 0x12c   : > { %1974 = vmatpush1.bf16.msra.mxu0 %v2892_v47  ;;  %2138 = vmatpush1.bf16.msra.mxu1 %v2895_v48  ;;  %v2973_v47 = vld [vmem:[%s3615_s27 + $0x3c8] ss:$16 sps:$4 sm:$0xff]   ;;  %v2978_v48 = vld [vmem:[%s3615_s27 + $0x3e4] ss:$16 sps:$4 sm:$0xff]   ;;  %v3012_v11 = vld [vmem:[%s3615_s27 + $0x4a0] ss:$16 sps:$4 sm:$0xff]  }
 0x12d   : > { %1975 = vmatprep.subr.bf16.mxu0 %v2900_v51  ;;  %2139 = vmatprep.subr.bf16.mxu1 %v2903_v52  ;;  %v2979_v51 = vld [vmem:[%s3615_s27 + $0x3e8] ss:$16 sps:$4 sm:$0xff]   ;;  %v2984_v52 = vld [vmem:[%s3615_s27 + $0x404] ss:$16 sps:$4 sm:$0xff]   ;;  %v3023_v14 = vld [vmem:[%s3615_s27 + $0x4cc] ss:$16 sps:$4 sm:$0xff]  }
 0x12e   : > { %v3018_v15 = vld [vmem:[%s3615_s27 + $0x4c0] ss:$16 sps:$4 sm:$0xff]  }
 0x130   : > { %1976 = vmatpush1.bf16.msra.mxu0 %v2898_v53  ;;  %2140 = vmatpush1.bf16.msra.mxu1 %v2901_v54  ;;  %v2987_v53 = vld [vmem:[%s3615_s27 + $0x40c] ss:$16 sps:$4 sm:$0xff]   ;;  %v2982_v54 = vld [vmem:[%s3615_s27 + $0x400] ss:$16 sps:$4 sm:$0xff]  }
 0x131   : > { %1977 = vmatprep.subr.bf16.mxu0 %v2906_v55  ;;  %2141 = vmatprep.subr.bf16.mxu1 %v2909_v56  ;;  %v384_v55 = vpack.c.bf16 %v3713_v39, %v3713_v39  ;;  %v2985_v56 = vld [vmem:[%s3615_s27 + $0x408] ss:$16 sps:$4 sm:$0xff]  }
 0x132   : > { %v2991_v39 = vld [vmem:[%s3615_s27 + $0x428] ss:$16 sps:$4 sm:$0xff]  }
 0x134   : > { %1978 = vmatpush1.bf16.msra.mxu0 %v2904_v57  ;;  %2142 = vmatpush1.bf16.msra.mxu1 %v2907_v58  ;;  %v387_v57 = vpack.c.bf16 %v3715_v41, %v3715_v41  ;;  %v2990_v58 = vld [vmem:[%s3615_s27 + $0x424] ss:$16 sps:$4 sm:$0xff]   ;;  %v2999_v41 = vld [vmem:[%s3615_s27 + $0x44c] ss:$16 sps:$4 sm:$0xff]  }
 0x135   : > { %1979 = vmatprep.subr.bf16.mxu0 %v2912_v59  ;;  %2143 = vmatprep.subr.bf16.mxu1 %v2915_v60  ;;  %v2993_v59 = vld [vmem:[%s3615_s27 + $0x42c] ss:$16 sps:$4 sm:$0xff]   ;;  %v2988_v60 = vld [vmem:[%s3615_s27 + $0x420] ss:$16 sps:$4 sm:$0xff]  }
 0x138   : > { %1980 = vmatpush1.bf16.msra.mxu0 %v2910_v61  ;;  %2144 = vmatpush1.bf16.msra.mxu1 %v2913_v62  ;;  %v2996_v61 = vld [vmem:[%s3615_s27 + $0x444] ss:$16 sps:$4 sm:$0xff]   ;;  %v2994_v62 = vld [vmem:[%s3615_s27 + $0x440] ss:$16 sps:$4 sm:$0xff]  }
 0x139   : > { %1981 = vmatprep.subr.bf16.mxu0 %v2918_v63  ;;  %2145 = vmatprep.subr.bf16.mxu1 %v2921_v0  ;;  %v2997_v63 = vld [vmem:[%s3615_s27 + $0x448] ss:$16 sps:$4 sm:$0xff]   ;;  %v3002_v0 = vld [vmem:[%s3615_s27 + $0x464] ss:$16 sps:$4 sm:$0xff]  }
 0x13c   : > { %1982 = vmatpush1.bf16.msra.mxu0 %v2916_v1  ;;  %2146 = vmatpush1.bf16.msra.mxu1 %v2919_v2  ;;  %v3005_v1 = vld [vmem:[%s3615_s27 + $0x46c] ss:$16 sps:$4 sm:$0xff]   ;;  %v3000_v2 = vld [vmem:[%s3615_s27 + $0x460] ss:$16 sps:$4 sm:$0xff]  }
 0x13d   : > { %1983 = vmatprep.subr.bf16.mxu0 %v2924_v3  ;;  %2147 = vmatprep.subr.bf16.mxu1 %v2927_v4  ;;  %v3003_v3 = vld [vmem:[%s3615_s27 + $0x468] ss:$16 sps:$4 sm:$0xff]   ;;  %v3008_v4 = vld [vmem:[%s3615_s27 + $0x484] ss:$16 sps:$4 sm:$0xff]  }
 0x140   : > { %1984 = vmatpush1.bf16.msra.mxu0 %v2922_v5  ;;  %2148 = vmatpush1.bf16.msra.mxu1 %v2925_v6  ;;  %v3011_v5 = vld [vmem:[%s3615_s27 + $0x48c] ss:$16 sps:$4 sm:$0xff]   ;;  %v3006_v6 = vld [vmem:[%s3615_s27 + $0x480] ss:$16 sps:$4 sm:$0xff]  }
 0x141   : > { %1985 = vmatprep.subr.bf16.mxu0 %v2930_v7  ;;  %2149 = vmatprep.subr.bf16.mxu1 %v2933_v8  ;;  %v3009_v7 = vld [vmem:[%s3615_s27 + $0x488] ss:$16 sps:$4 sm:$0xff]   ;;  %v3014_v8 = vld [vmem:[%s3615_s27 + $0x4a4] ss:$16 sps:$4 sm:$0xff]  }
 0x144   : > { %1986 = vmatpush1.bf16.msra.mxu0 %v2928_v12  ;;  %2150 = vmatpush1.bf16.msra.mxu1 %v2931_v13  ;;  %v3015_v12 = vld [vmem:[%s3615_s27 + $0x4a8] ss:$16 sps:$4 sm:$0xff]   ;;  %v3020_v13 = vld [vmem:[%s3615_s27 + $0x4c4] ss:$16 sps:$4 sm:$0xff]  }
 0x145   : > { %1987 = vmatprep.subr.bf16.mxu0 %v2936_v16  ;;  %2151 = vmatprep.subr.bf16.mxu1 %v2939_v17  ;;  %v3021_v16 = vld [vmem:[%s3615_s27 + $0x4c8] ss:$16 sps:$4 sm:$0xff]   ;;  %v3026_v17 = vld [vmem:[%s3615_s27 + $0x4e4] ss:$16 sps:$4 sm:$0xff]  }
 0x148   : > { %1988 = vmatpush1.bf16.msra.mxu0 %v2934_v19  ;;  %2152 = vmatpush1.bf16.msra.mxu1 %v2937_v21  ;;  %v3029_v19 = vld [vmem:[%s3615_s27 + $0x4ec] ss:$16 sps:$4 sm:$0xff]   ;;  %v3024_v21 = vld [vmem:[%s3615_s27 + $0x4e0] ss:$16 sps:$4 sm:$0xff]  }
 0x149   : > { %1989 = vmatprep.subr.bf16.mxu0 %v2942_v9  ;;  %2153 = vmatprep.subr.bf16.mxu1 %v2945_v20  ;;  %v3027_v9 = vld [vmem:[%s3615_s27 + $0x4e8] ss:$16 sps:$4 sm:$0xff]   ;;  %v3032_v20 = vld [vmem:[%s3615_s27 + $0x504] ss:$16 sps:$4 sm:$0xff]  }
 0x14c   : > { %1990 = vmatpush1.bf16.msra.mxu0 %v2940_v22  ;;  %2154 = vmatpush1.bf16.msra.mxu1 %v2943_v23  ;;  %v3035_v22 = vld [vmem:[%s3615_s27 + $0x50c] ss:$16 sps:$4 sm:$0xff]   ;;  %v3030_v23 = vld [vmem:[%s3615_s27 + $0x500] ss:$16 sps:$4 sm:$0xff]  }
 0x14d   : > { %1991 = vmatprep.subr.bf16.mxu0 %v2948_v24  ;;  %2155 = vmatprep.subr.bf16.mxu1 %v2951_v25  ;;  %v3033_v24 = vld [vmem:[%s3615_s27 + $0x508] ss:$16 sps:$4 sm:$0xff]   ;;  %v3038_v25 = vld [vmem:[%s3615_s27 + $0x524] ss:$16 sps:$4 sm:$0xff]  }
 0x150   : > { %1992 = vmatpush1.bf16.msra.mxu0 %v2946_v26  ;;  %2156 = vmatpush1.bf16.msra.mxu1 %v2949_v27  ;;  %v3041_v26 = vld [vmem:[%s3615_s27 + $0x52c] ss:$16 sps:$4 sm:$0xff]   ;;  %v3036_v27 = vld [vmem:[%s3615_s27 + $0x520] ss:$16 sps:$4 sm:$0xff]  }
 0x151   : > { %1993 = vmatprep.subr.bf16.mxu0 %v2954_v28  ;;  %2157 = vmatprep.subr.bf16.mxu1 %v2957_v29  ;;  %v3039_v28 = vld [vmem:[%s3615_s27 + $0x528] ss:$16 sps:$4 sm:$0xff]   ;;  %v3044_v29 = vld [vmem:[%s3615_s27 + $0x544] ss:$16 sps:$4 sm:$0xff]  }
 0x154   : > { %1994 = vmatpush1.bf16.msra.mxu0 %v2952_v30  ;;  %2158 = vmatpush1.bf16.msra.mxu1 %v2955_v31  ;;  %v3047_v30 = vld [vmem:[%s3615_s27 + $0x54c] ss:$16 sps:$4 sm:$0xff]   ;;  %v3042_v31 = vld [vmem:[%s3615_s27 + $0x540] ss:$16 sps:$4 sm:$0xff]  }
 0x155   : > { %1995 = vmatprep.subr.bf16.mxu0 %v2960_v32  ;;  %2159 = vmatprep.subr.bf16.mxu1 %v2963_v33  ;;  %v3045_v32 = vld [vmem:[%s3615_s27 + $0x548] ss:$16 sps:$4 sm:$0xff]   ;;  %v3050_v33 = vld [vmem:[%s3615_s27 + $0x564] ss:$16 sps:$4 sm:$0xff]  }
 0x158   : > { %1996 = vmatpush1.bf16.msra.mxu0 %v2958_v34  ;;  %2160 = vmatpush1.bf16.msra.mxu1 %v2961_v35  ;;  %v3053_v34 = vld [vmem:[%s3615_s27 + $0x56c] ss:$16 sps:$4 sm:$0xff]   ;;  %v3048_v35 = vld [vmem:[%s3615_s27 + $0x560] ss:$16 sps:$4 sm:$0xff]  }
 0x159   : > { %1997 = vmatprep.subr.bf16.mxu0 %v2966_v36  ;;  %2161 = vmatprep.subr.bf16.mxu1 %v2969_v37  ;;  %v3051_v36 = vld [vmem:[%s3615_s27 + $0x568] ss:$16 sps:$4 sm:$0xff]   ;;  %v3056_v37 = vld [vmem:[%s3615_s27 + $0x584] ss:$16 sps:$4 sm:$0xff]  }
 0x15c   : > { %1998 = vmatpush1.bf16.msra.mxu0 %v2964_v38  ;;  %2162 = vmatpush1.bf16.msra.mxu1 %v2967_v40  ;;  %v3059_v38 = vld [vmem:[%s3615_s27 + $0x58c] ss:$16 sps:$4 sm:$0xff]   ;;  %v3054_v40 = vld [vmem:[%s3615_s27 + $0x580] ss:$16 sps:$4 sm:$0xff]  }
 0x15d   : > { %1999 = vmatprep.subr.bf16.mxu0 %v2972_v44  ;;  %2163 = vmatprep.subr.bf16.mxu1 %v2975_v45  ;;  %v3057_v44 = vld [vmem:[%s3615_s27 + $0x588] ss:$16 sps:$4 sm:$0xff]   ;;  %v3062_v45 = vld [vmem:[%s3615_s27 + $0x5a4] ss:$16 sps:$4 sm:$0xff]  }
 0x160   : > { %2000 = vmatpush1.bf16.msra.mxu0 %v2970_v46  ;;  %2164 = vmatpush1.bf16.msra.mxu1 %v2973_v47  ;;  %v3065_v46 = vld [vmem:[%s3615_s27 + $0x5ac] ss:$16 sps:$4 sm:$0xff]   ;;  %v3060_v47 = vld [vmem:[%s3615_s27 + $0x5a0] ss:$16 sps:$4 sm:$0xff]  }
 0x161   : > { %2001 = vmatprep.subr.bf16.mxu0 %v2978_v48  ;;  %2165 = vmatprep.subr.bf16.mxu1 %v2981_v49  ;;  %v3063_v48 = vld [vmem:[%s3615_s27 + $0x5a8] ss:$16 sps:$4 sm:$0xff]   ;;  %v3068_v49 = vld [vmem:[%s3615_s27 + $0x5c4] ss:$16 sps:$4 sm:$0xff]  }
 0x164   : > { %2002 = vmatpush1.bf16.msra.mxu0 %v2976_v50  ;;  %2166 = vmatpush1.bf16.msra.mxu1 %v2979_v51  ;;  %v3071_v50 = vld [vmem:[%s3615_s27 + $0x5cc] ss:$16 sps:$4 sm:$0xff]   ;;  %v3066_v51 = vld [vmem:[%s3615_s27 + $0x5c0] ss:$16 sps:$4 sm:$0xff]  }
 0x165   : > { %2012 = vmatprep.subr.bf16.mxu0 %v2984_v52  ;;  %2176 = vmatprep.subr.bf16.mxu1 %v2987_v53  ;;  %v3069_v52 = vld [vmem:[%s3615_s27 + $0x5c8] ss:$16 sps:$4 sm:$0xff]   ;;  %v3074_v53 = vld [vmem:[%s3615_s27 + $0x5e4] ss:$16 sps:$4 sm:$0xff]  }
 0x167   : > { %2004 = vmatmul.mubr.bf16.vlgmr.msra.gmra.mrb[0].mxu0 %v384_v55  ;;  %2168 = vmatmul.mubr.bf16.vlgmr.msra.gmra.mrb[0].mxu1 %v384_v55  ;;  %v3072_v55 = vld [vmem:[%s3615_s27 + $0x5e0] ss:$16 sps:$4 sm:$0xff]  }
 0x168   : > { %2013 = vmatpush1.bf16.msra.mxu0 %v2982_v54  ;;  %2044 = vmatprep.mubr.bf16.mxu0 %v387_v57  ;;  %v3077_v54 = vld [vmem:[%s3615_s27 + $0x5ec] ss:$16 sps:$4 sm:$0xff]  }
 0x169   : > { %2177 = vmatpush1.bf16.msra.mxu1 %v2985_v56  ;;  %2208 = vmatprep.mubr.bf16.mxu1 %v387_v57  ;;  %v3075_v56 = vld [vmem:[%s3615_s27 + $0x5e8] ss:$16 sps:$4 sm:$0xff]   ;;  %v3080_v57 = vld [vmem:[%s3615_s27 + $0x604] ss:$16 sps:$4 sm:$0xff]  }
 0x16a   : > { %2014 = vmatprep.subr.bf16.mxu0 %v2990_v58  ;;  %2178 = vmatprep.subr.bf16.mxu1 %v2993_v59  ;;  %v3083_v58 = vld [vmem:[%s3615_s27 + $0x60c] ss:$16 sps:$4 sm:$0xff]   ;;  %v3078_v59 = vld [vmem:[%s3615_s27 + $0x600] ss:$16 sps:$4 sm:$0xff]  }
 0x16c   : > { %2015 = vmatpush1.bf16.msra.mxu0 %v2988_v60  ;;  %v386_v60 = vpack.c.bf16 %v3717_v42, %v3717_v42  ;;  %v3087_v42 = vld [vmem:[%s3615_s27 + $0x628] ss:$16 sps:$4 sm:$0xff]  }
 0x16d   : > { %2179 = vmatpush1.bf16.msra.mxu1 %v2991_v39  ;;  %2016 = vmatprep.subr.bf16.mxu0 %v2996_v61  ;;  %v3081_v39 = vld [vmem:[%s3615_s27 + $0x608] ss:$16 sps:$4 sm:$0xff]   ;;  %v3086_v61 = vld [vmem:[%s3615_s27 + $0x624] ss:$16 sps:$4 sm:$0xff]  }
 0x16e   : > { %2180 = vmatprep.subr.bf16.mxu1 %v2999_v41  ;;  %v389_v41 = vpack.c.bf16 %v3719_v43, %v3719_v43  ;;  %v3090_v43 = vld [vmem:[%s3615_s27 + $0x640] ss:$16 sps:$4 sm:$0xff]  }
 0x170   : > { %2017 = vmatpush1.bf16.msra.mxu0 %v2994_v62  ;;  %v3089_v62 = vld [vmem:[%s3615_s27 + $0x62c] ss:$16 sps:$4 sm:$0xff]  }
 0x171   : > { %2181 = vmatpush1.bf16.msra.mxu1 %v2997_v63  ;;  %2018 = vmatprep.subr.bf16.mxu0 %v3002_v0  ;;  %v3084_v63 = vld [vmem:[%s3615_s27 + $0x620] ss:$16 sps:$4 sm:$0xff]   ;;  %v3092_v0 = vld [vmem:[%s3615_s27 + $0x644] ss:$16 sps:$4 sm:$0xff]  }
 0x172   : > { %2182 = vmatprep.subr.bf16.mxu1 %v3005_v1  ;;  %v3095_v1 = vld [vmem:[%s3615_s27 + $0x64c] ss:$16 sps:$4 sm:$0xff]  }
 0x174   : > { %2019 = vmatpush1.bf16.msra.mxu0 %v3000_v2  ;;  %v3093_v2 = vld [vmem:[%s3615_s27 + $0x648] ss:$16 sps:$4 sm:$0xff]  }
 0x175   : > { %2183 = vmatpush1.bf16.msra.mxu1 %v3003_v3  ;;  %2020 = vmatprep.subr.bf16.mxu0 %v3008_v4  ;;  %v3098_v3 = vld [vmem:[%s3615_s27 + $0x664] ss:$16 sps:$4 sm:$0xff]   ;;  %v3101_v4 = vld [vmem:[%s3615_s27 + $0x66c] ss:$16 sps:$4 sm:$0xff]  }
 0x176   : > { %2184 = vmatprep.subr.bf16.mxu1 %v3011_v5  ;;  %v3096_v5 = vld [vmem:[%s3615_s27 + $0x660] ss:$16 sps:$4 sm:$0xff]  }
 0x178   : > { %2021 = vmatpush1.bf16.msra.mxu0 %v3006_v6  ;;  %v3099_v6 = vld [vmem:[%s3615_s27 + $0x668] ss:$16 sps:$4 sm:$0xff]  }
 0x179   : > { %2185 = vmatpush1.bf16.msra.mxu1 %v3009_v7  ;;  %2022 = vmatprep.subr.bf16.mxu0 %v3014_v8  ;;  %v3104_v7 = vld [vmem:[%s3615_s27 + $0x684] ss:$16 sps:$4 sm:$0xff]   ;;  %v3107_v8 = vld [vmem:[%s3615_s27 + $0x68c] ss:$16 sps:$4 sm:$0xff]  }
 0x17a   : > { %2186 = vmatprep.subr.bf16.mxu1 %v3017_v10  ;;  %v3102_v10 = vld [vmem:[%s3615_s27 + $0x680] ss:$16 sps:$4 sm:$0xff]  }
 0x17c   : > { %2023 = vmatpush1.bf16.msra.mxu0 %v3012_v11  ;;  %v3105_v11 = vld [vmem:[%s3615_s27 + $0x688] ss:$16 sps:$4 sm:$0xff]  }
 0x17d   : > { %2187 = vmatpush1.bf16.msra.mxu1 %v3015_v12  ;;  %2024 = vmatprep.subr.bf16.mxu0 %v3020_v13  ;;  %v3110_v12 = vld [vmem:[%s3615_s27 + $0x6a4] ss:$16 sps:$4 sm:$0xff]   ;;  %v3113_v13 = vld [vmem:[%s3615_s27 + $0x6ac] ss:$16 sps:$4 sm:$0xff]  }
 0x17e   : > { %2188 = vmatprep.subr.bf16.mxu1 %v3023_v14  ;;  %v3108_v14 = vld [vmem:[%s3615_s27 + $0x6a0] ss:$16 sps:$4 sm:$0xff]  }
 0x180   : > { %2025 = vmatpush1.bf16.msra.mxu0 %v3018_v15  ;;  %v3111_v15 = vld [vmem:[%s3615_s27 + $0x6a8] ss:$16 sps:$4 sm:$0xff]  }
 0x181   : > { %2189 = vmatpush1.bf16.msra.mxu1 %v3021_v16  ;;  %2026 = vmatprep.subr.bf16.mxu0 %v3026_v17  ;;  %v3116_v16 = vld [vmem:[%s3615_s27 + $0x6c4] ss:$16 sps:$4 sm:$0xff]   ;;  %v3119_v17 = vld [vmem:[%s3615_s27 + $0x6cc] ss:$16 sps:$4 sm:$0xff]  }
 0x182   : > { %2190 = vmatprep.subr.bf16.mxu1 %v3029_v19  ;;  %v3114_v19 = vld [vmem:[%s3615_s27 + $0x6c0] ss:$16 sps:$4 sm:$0xff]  }
 0x184   : > { %2027 = vmatpush1.bf16.msra.mxu0 %v3024_v21  ;;  %v3117_v21 = vld [vmem:[%s3615_s27 + $0x6c8] ss:$16 sps:$4 sm:$0xff]  }
 0x185   : > { %2191 = vmatpush1.bf16.msra.mxu1 %v3027_v9  ;;  %2028 = vmatprep.subr.bf16.mxu0 %v3032_v20  ;;  %v3122_v9 = vld [vmem:[%s3615_s27 + $0x6e4] ss:$16 sps:$4 sm:$0xff]   ;;  %v3125_v20 = vld [vmem:[%s3615_s27 + $0x6ec] ss:$16 sps:$4 sm:$0xff]  }
 0x186   : > { %2192 = vmatprep.subr.bf16.mxu1 %v3035_v22  ;;  %v3120_v22 = vld [vmem:[%s3615_s27 + $0x6e0] ss:$16 sps:$4 sm:$0xff]  }
 0x188   : > { %2029 = vmatpush1.bf16.msra.mxu0 %v3030_v23  ;;  %v3123_v23 = vld [vmem:[%s3615_s27 + $0x6e8] ss:$16 sps:$4 sm:$0xff]  }
 0x189   : > { %2193 = vmatpush1.bf16.msra.mxu1 %v3033_v24  ;;  %2030 = vmatprep.subr.bf16.mxu0 %v3038_v25  ;;  %v3128_v24 = vld [vmem:[%s3615_s27 + $0x704] ss:$16 sps:$4 sm:$0xff]   ;;  %v3131_v25 = vld [vmem:[%s3615_s27 + $0x70c] ss:$16 sps:$4 sm:$0xff]  }
 0x18a   : > { %2194 = vmatprep.subr.bf16.mxu1 %v3041_v26  ;;  %v3126_v26 = vld [vmem:[%s3615_s27 + $0x700] ss:$16 sps:$4 sm:$0xff]  }
 0x18c   : > { %2031 = vmatpush1.bf16.msra.mxu0 %v3036_v27  ;;  %v3129_v27 = vld [vmem:[%s3615_s27 + $0x708] ss:$16 sps:$4 sm:$0xff]  }
 0x18d   : > { %2195 = vmatpush1.bf16.msra.mxu1 %v3039_v28  ;;  %2032 = vmatprep.subr.bf16.mxu0 %v3044_v29  ;;  %v3134_v28 = vld [vmem:[%s3615_s27 + $0x724] ss:$16 sps:$4 sm:$0xff]   ;;  %v3137_v29 = vld [vmem:[%s3615_s27 + $0x72c] ss:$16 sps:$4 sm:$0xff]  }
 0x18e   : > { %2196 = vmatprep.subr.bf16.mxu1 %v3047_v30  ;;  %v3132_v30 = vld [vmem:[%s3615_s27 + $0x720] ss:$16 sps:$4 sm:$0xff]  }
 0x190   : > { %2033 = vmatpush1.bf16.msra.mxu0 %v3042_v31  ;;  %v3135_v31 = vld [vmem:[%s3615_s27 + $0x728] ss:$16 sps:$4 sm:$0xff]  }
 0x191   : > { %2197 = vmatpush1.bf16.msra.mxu1 %v3045_v32  ;;  %2034 = vmatprep.subr.bf16.mxu0 %v3050_v33  ;;  %v3140_v32 = vld [vmem:[%s3615_s27 + $0x744] ss:$16 sps:$4 sm:$0xff]   ;;  %v3143_v33 = vld [vmem:[%s3615_s27 + $0x74c] ss:$16 sps:$4 sm:$0xff]  }
 0x192   : > { %2198 = vmatprep.subr.bf16.mxu1 %v3053_v34  ;;  %v3138_v34 = vld [vmem:[%s3615_s27 + $0x740] ss:$16 sps:$4 sm:$0xff]  }
 0x194   : > { %2035 = vmatpush1.bf16.msra.mxu0 %v3048_v35  ;;  %v3141_v35 = vld [vmem:[%s3615_s27 + $0x748] ss:$16 sps:$4 sm:$0xff]  }
 0x195   : > { %2199 = vmatpush1.bf16.msra.mxu1 %v3051_v36  ;;  %2036 = vmatprep.subr.bf16.mxu0 %v3056_v37  ;;  %v3146_v36 = vld [vmem:[%s3615_s27 + $0x764] ss:$16 sps:$4 sm:$0xff]   ;;  %v3149_v37 = vld [vmem:[%s3615_s27 + $0x76c] ss:$16 sps:$4 sm:$0xff]  }
 0x196   : > { %2200 = vmatprep.subr.bf16.mxu1 %v3059_v38  ;;  %v3144_v38 = vld [vmem:[%s3615_s27 + $0x760] ss:$16 sps:$4 sm:$0xff]  }
 0x198   : > { %2037 = vmatpush1.bf16.msra.mxu0 %v3054_v40  ;;  %v3147_v40 = vld [vmem:[%s3615_s27 + $0x768] ss:$16 sps:$4 sm:$0xff]  }
 0x199   : > { %2201 = vmatpush1.bf16.msra.mxu1 %v3057_v44  ;;  %2038 = vmatprep.subr.bf16.mxu0 %v3062_v45  ;;  %v3152_v44 = vld [vmem:[%s3615_s27 + $0x784] ss:$16 sps:$4 sm:$0xff]   ;;  %v3155_v45 = vld [vmem:[%s3615_s27 + $0x78c] ss:$16 sps:$4 sm:$0xff]  }
 0x19a   : > { %2202 = vmatprep.subr.bf16.mxu1 %v3065_v46  ;;  %v3150_v46 = vld [vmem:[%s3615_s27 + $0x780] ss:$16 sps:$4 sm:$0xff]  }
 0x19c   : > { %2039 = vmatpush1.bf16.msra.mxu0 %v3060_v47  ;;  %v3153_v47 = vld [vmem:[%s3615_s27 + $0x788] ss:$16 sps:$4 sm:$0xff]  }
 0x19d   : > { %2203 = vmatpush1.bf16.msra.mxu1 %v3063_v48  ;;  %2040 = vmatprep.subr.bf16.mxu0 %v3068_v49  ;;  %v3158_v48 = vld [vmem:[%s3615_s27 + $0x7a4] ss:$16 sps:$4 sm:$0xff]   ;;  %v3161_v49 = vld [vmem:[%s3615_s27 + $0x7ac] ss:$16 sps:$4 sm:$0xff]  }
 0x19e   : > { %2204 = vmatprep.subr.bf16.mxu1 %v3071_v50  ;;  %v3156_v50 = vld [vmem:[%s3615_s27 + $0x7a0] ss:$16 sps:$4 sm:$0xff]  }
 0x1a0   : > { %2041 = vmatpush1.bf16.msra.mxu0 %v3066_v51  ;;  %v3159_v51 = vld [vmem:[%s3615_s27 + $0x7a8] ss:$16 sps:$4 sm:$0xff]  }
 0x1a1   : > { %2205 = vmatpush1.bf16.msra.mxu1 %v3069_v52  ;;  %2042 = vmatprep.subr.bf16.mxu0 %v3074_v53  ;;  %v3164_v52 = vld [vmem:[%s3615_s27 + $0x7c4] ss:$16 sps:$4 sm:$0xff]   ;;  %v3167_v53 = vld [vmem:[%s3615_s27 + $0x7cc] ss:$16 sps:$4 sm:$0xff]  }
 0x1a2   : > { %2206 = vmatprep.subr.bf16.mxu1 %v3077_v54  ;;  %v3162_v54 = vld [vmem:[%s3615_s27 + $0x7c0] ss:$16 sps:$4 sm:$0xff]  }
 0x1a4   : > { %2043 = vmatpush1.bf16.msra.mxu0 %v3072_v55  ;;  %v3165_v55 = vld [vmem:[%s3615_s27 + $0x7c8] ss:$16 sps:$4 sm:$0xff]  }
 0x1a5   : > { %2207 = vmatpush1.bf16.msra.mxu1 %v3075_v56  ;;  %2053 = vmatprep.subr.bf16.mxu0 %v3080_v57  ;;  %v3170_v56 = vld [vmem:[%s3615_s27 + $0x7e4] ss:$16 sps:$4 sm:$0xff]   ;;  %v3173_v57 = vld [vmem:[%s3615_s27 + $0x7ec] ss:$16 sps:$4 sm:$0xff]  }
 0x1a6   : > { %2217 = vmatprep.subr.bf16.mxu1 %v3083_v58  ;;  %v3168_v58 = vld [vmem:[%s3615_s27 + $0x7e0] ss:$16 sps:$4 sm:$0xff]  }
 0x1a7   : > { %2045 = vmatmul.mubr.bf16.vlgmr.msra.gmra.mrb[0].mxu0 %v386_v60 }
 0x1a8   : > { %2209 = vmatmul.mubr.bf16.vlgmr.msra.gmra.mrb[0].mxu1 %v386_v60  ;;  %2054 = vmatpush1.bf16.msra.mxu0 %v3078_v59  ;;  %v3171_v59 = vld [vmem:[%s3615_s27 + $0x7e8] ss:$16 sps:$4 sm:$0xff]   ;;  %v388_v60 = vpack.c.bf16 %v3753_v18, %v3753_v18  ;;  %s3294_s27 = sshll.u32 %s3374_s25, 4  ;;  %s3295_s27 = int_to_ptr.vmem [resolvable:$false] %s3294_s27 }
 0x1a9   : > { %2085 = vmatprep.mubr.bf16.mxu0 %v389_v41  ;;  %2218 = vmatpush1.bf16.msra.mxu1 %v3081_v39  ;;  %v646_v39 = vld [vmem:[%s294_s28] sm:$0xff]  ;;  %v2264_v18 = vld [vmem:[%s2262_s20 + $0x8] sm:$0xff]  ;;  %s3296_s4 = scalar_lea.vmem %s3295_s27, 256  ;;  %p3297_p9 = scmp.lt.s32.totalorder %s3932_s17, %s3295_s27 }
 0x1aa   : > { %2249 = vmatprep.mubr.bf16.mxu1 %v389_v41  ;;  %2055 = vmatprep.subr.bf16.mxu0 %v3086_v61  ;;  %v648_v61 = vld [vmem:[%s294_s28 + $0x10] sm:$0xff]  ;;  %v647_v41 = vld [vmem:[%s294_s28 + $0x8] sm:$0xff]  ;;  %p3298_p2 = scmp.lt.s32.totalorder %s3296_s4, %s3290_s0 }
 0x1ab   : > { %2219 = vmatprep.subr.bf16.mxu1 %v3089_v62 }
 0x1ac   : > { %2056 = vmatpush1.bf16.msra.mxu0 %v3084_v63  ;;  %v2263_v63 = vld [vmem:[%s2262_s20] sm:$0xff]  ;;  %p3299_p5 = por %p3298_p2, %p3297_p9 }
 0x1ad   : > { %2220 = vmatpush1.bf16.msra.mxu1 %v3087_v42  ;;  %2057 = vmatprep.subr.bf16.mxu0 %v3092_v0  ;;  %v649_v42 = vld [vmem:[%s294_s28 + $0x18] sm:$0xff] }
 0x1ae   : > { %2221 = vmatprep.subr.bf16.mxu1 %v3095_v1  ;;  %p3300_p7 = pnand %p3299_p5, %p3293_p11 }
 0x1b0   : > { %2058 = vmatpush1.bf16.msra.mxu0 %v3090_v43  ;;  %v2265_v43 = vld [vmem:[%s2262_s20 + $0x10] sm:$0xff] }
 0x1b1   : > { %2222 = vmatpush1.bf16.msra.mxu1 %v3093_v2  ;;  %2059 = vmatprep.subr.bf16.mxu0 %v3098_v3 }
 0x1b2   : > { %2223 = vmatprep.subr.bf16.mxu1 %v3101_v4 }
 0x1b4   : > { %2060 = vmatpush1.bf16.msra.mxu0 %v3096_v5 }
 0x1b5   : > { %2224 = vmatpush1.bf16.msra.mxu1 %v3099_v6  ;;  %2061 = vmatprep.subr.bf16.mxu0 %v3104_v7 }
 0x1b6   : > { %2225 = vmatprep.subr.bf16.mxu1 %v3107_v8 }
 0x1b8   : > { %2062 = vmatpush1.bf16.msra.mxu0 %v3102_v10  ;;  %v2266_v10 = vld [vmem:[%s2262_s20 + $0x18] sm:$0xff] }
 0x1b9   : > { %2226 = vmatpush1.bf16.msra.mxu1 %v3105_v11  ;;  %2063 = vmatprep.subr.bf16.mxu0 %v3110_v12 }
 0x1ba   : > { %2227 = vmatprep.subr.bf16.mxu1 %v3113_v13 }
 0x1bc   : > { %2064 = vmatpush1.bf16.msra.mxu0 %v3108_v14 }
 0x1bd   : > { %2228 = vmatpush1.bf16.msra.mxu1 %v3111_v15  ;;  %2065 = vmatprep.subr.bf16.mxu0 %v3116_v16 }
 0x1be   : > { %2229 = vmatprep.subr.bf16.mxu1 %v3119_v17 }
 0x1c0   : > { %2066 = vmatpush1.bf16.msra.mxu0 %v3114_v19 }
 0x1c1   : > { %2230 = vmatpush1.bf16.msra.mxu1 %v3117_v21  ;;  %2067 = vmatprep.subr.bf16.mxu0 %v3122_v9 }
 0x1c2   : > { %2231 = vmatprep.subr.bf16.mxu1 %v3125_v20 }
 0x1c4   : > { %2068 = vmatpush1.bf16.msra.mxu0 %v3120_v22 }
 0x1c5   : > { %2232 = vmatpush1.bf16.msra.mxu1 %v3123_v23  ;;  %2069 = vmatprep.subr.bf16.mxu0 %v3128_v24 }
 0x1c6   : > { %2233 = vmatprep.subr.bf16.mxu1 %v3131_v25 }
 0x1c8   : > { %2070 = vmatpush1.bf16.msra.mxu0 %v3126_v26 }
 0x1c9   : > { %2234 = vmatpush1.bf16.msra.mxu1 %v3129_v27  ;;  %2071 = vmatprep.subr.bf16.mxu0 %v3134_v28 }
 0x1ca   : > { %2235 = vmatprep.subr.bf16.mxu1 %v3137_v29 }
 0x1cc   : > { %2072 = vmatpush1.bf16.msra.mxu0 %v3132_v30 }
 0x1cd   : > { %2236 = vmatpush1.bf16.msra.mxu1 %v3135_v31  ;;  %2073 = vmatprep.subr.bf16.mxu0 %v3140_v32 }
 0x1ce   : > { %2237 = vmatprep.subr.bf16.mxu1 %v3143_v33 }
 0x1d0   : > { %2074 = vmatpush1.bf16.msra.mxu0 %v3138_v34 }
 0x1d1   : > { %2238 = vmatpush1.bf16.msra.mxu1 %v3141_v35  ;;  %2075 = vmatprep.subr.bf16.mxu0 %v3146_v36 }
 0x1d2   : > { %2239 = vmatprep.subr.bf16.mxu1 %v3149_v37 }
 0x1d4   : > { %2076 = vmatpush1.bf16.msra.mxu0 %v3144_v38 }
 0x1d5   : > { %2240 = vmatpush1.bf16.msra.mxu1 %v3147_v40  ;;  %2077 = vmatprep.subr.bf16.mxu0 %v3152_v44 }
 0x1d6   : > { %2241 = vmatprep.subr.bf16.mxu1 %v3155_v45 }
 0x1d8   : > { %2078 = vmatpush1.bf16.msra.mxu0 %v3150_v46 }
 0x1d9   : > { %2242 = vmatpush1.bf16.msra.mxu1 %v3153_v47  ;;  %2079 = vmatprep.subr.bf16.mxu0 %v3158_v48 }
 0x1da   : > { %2243 = vmatprep.subr.bf16.mxu1 %v3161_v49 }
 0x1dc   : > { %2080 = vmatpush1.bf16.msra.mxu0 %v3156_v50 }
 0x1dd   : > { %2244 = vmatpush1.bf16.msra.mxu1 %v3159_v51  ;;  %2081 = vmatprep.subr.bf16.mxu0 %v3164_v52 }
 0x1de   : > { %2245 = vmatprep.subr.bf16.mxu1 %v3167_v53 }
 0x1e0   : > { %2082 = vmatpush1.bf16.msra.mxu0 %v3162_v54 }
 0x1e1   : > { %2246 = vmatpush1.bf16.msra.mxu1 %v3165_v55  ;;  %2083 = vmatprep.subr.bf16.mxu0 %v3170_v56 }
 0x1e2   : > { %2247 = vmatprep.subr.bf16.mxu1 %v3173_v57 }
 0x1e4   : > { %2084 = vmatpush1.bf16.msra.mxu0 %v3168_v58 }
 0x1e5   : > { %2248 = vmatpush1.bf16.msra.mxu1 %v3171_v59 }
 0x1e7   : > { %2086 = vmatmul.mubr.bf16.vlgmr.msra.gmra.mrb[0].mxu0 %v388_v60 }
 0x1e8   : > { %2250 = vmatmul.mubr.bf16.vlgmr.msra.gmra.mrb[0].mxu1 %v388_v60 }
 0x2ba   : > { %v2087_v62 = vpop.f32.mrb[0].mxu0 }
 0x2bb   : > { %v2685_v0 = vadd.f32 %v2087_v62, %v646_v39  ;;  %v2251_v1 = vpop.f32.mrb[0].mxu1  ;;  %v2089_v2 = vpop.f32.mrb[1].mxu0 }
 0x2bc   : > { %v2687_v3 = vadd.f32 %v2251_v1, %v648_v61  ;;  %v2686_v4 = vadd.f32 %v2089_v2, %v647_v41  ;;  %v2253_v5 = vpop.f32.mrb[1].mxu1  ;;  %v2091_v6 = vpop.f32.mrb[2].mxu0 }
 0x2bd   : > { %v2267_v7 = vsub.f32 %v2263_v63, %v2685_v0  ;;  %v2688_v8 = vadd.f32 %v2253_v5, %v649_v42  ;;  %v2255_v11 = vpop.f32.mrb[2].mxu1  ;;  %v2092_v12 = vpop.f32.mrb[3].mxu0 }
 0x2be   : > { %v2269_v13 = vsub.f32 %v2265_v43, %v2687_v3  ;;  %v2268_v14 = vsub.f32 %v2264_v18, %v2686_v4  ;;  %v2256_v15 = vpop.f32.mrb[3].mxu1 }
 0x2bf   : > { %v2271_v16 = vmul.f32 %v2267_v7, %v2267_v7  ;;  %v2270_v19 = vsub.f32 %v2266_v10, %v2688_v8 }
 0x2c0   : > { %v2272_v17 = vmul.f32 %v2268_v14, %v2268_v14  ;;  %v2273_v21 = vmul.f32 %v2269_v13, %v2269_v13 }
 0x2c1   : > { %v2274_v20 = vmul.f32 %v2270_v19, %v2270_v19 }
 0x2c2   : > { %v2275_v9 = vadd.f32 %v2272_v17, %v2271_v16 }
 0x2c4   : > { %v2276_v22 = vadd.f32 %v2275_v9, %v2273_v21 }
 0x2c6   : > { %v2277_v23 = vadd.f32 %v2276_v22, %v2274_v20 }
 0x2c8   : > { %2278 = vst [vmem:[%s327_s29] sm:$0xff] %v2277_v23 }
 0x2c9   : > { %3303 = shalt.err (!%p3300_p7)
}
 0x2ca   : > { %s3304_s18 = scalar_lea.hbm %s3930_s16, 128  ;;  %s3308_s19 = scalar_lea.hbm %s3980_s6, 256 }
 0x2cb   : > { %p3305_p4 = scmp.ne.s32.totalorder %s3930_s16, %s3304_s18  ;;  %p3309_p13 = scmp.lt.u32.totalorder %s3930_s16, %s3980_s6 }
 0x2cc   : > { %p3310_p3 = scmp.lt.u32.totalorder %s3308_s19, %s3304_s18  ;;  %p3312_p8 = scmp.lt.u32.totalorder %s3304_s18, %s3930_s16 }
 0x2cd   : > { %p3306_p0 = pnand %p3305_p4, %p4023_p10 }
 0x2ce   : > { %p3311_p12 = por %p3310_p3, %p3309_p13 }
 0x2cf   : > { %p3307_p6 = pneg %p3306_p0 }
 0x2d0   : > { %p3313_p1 = por %p3312_p8, %p3311_p12 }
 0x2d2   : > { %p3314_p11 = pnand %p3313_p1, %p3307_p6 }
 0x2d4   : > { %3317 = shalt.err (!%p3314_p11)
}
 0x2d5   : > { %2725 = dma.vmem_to_hbm [thread:$0]  (%p4023_p10), %s3932_s17, 128, %s3930_s16, %s2280_s11  }
 0x2d6 PF: > { %s4024_s26 = sld [smem:[#allocation14_spill]]  ;;  %s4025_s14 = sld [smem:[#allocation17_spill]] }
 0x2d7   : > { %p4027_p2 = scmp.ge.s32.totalorder %s3364_s24, 2 }
 0x2dc   : > { %s2305_s28 = sand.u32 1, %s4024_s26   ;;  %p4026_p9 = scmp.ne.s32.totalorder %s4025_s14, 0 }
 0x2dd   : > { %s2306_s20 = scalar_lea.sflag [#allocation4], %s2305_s28 }
 0x2de   : > { %p2742_p5 = pnand %p4027_p2, %p4026_p9 }
 0x2e0   : > { %3347 = dma.done.wait (!%p2742_p5), %s2306_s20, 128  }
 0x2e1   : > { %3349 = vsyncadd (!%p2742_p5), %s2306_s20, 4294967168  ;;  %s4028_s24 = sld [smem:[#allocation15_spill]]  ;;  %s4029_s12 = sld [smem:[#allocation16_spill]] }
 0x2e2   : > { %s4030_s21 = smov %s3356_s22  ;;  %s4031_s22 = smov %s3360_s23 }
 0x2e7   : > { %p18_p7 = scmp.ge.s32.totalorder %s4028_s24, 4   ;;  %s4032_s23 = smov %s4029_s12 }
 0x2e9   :  { %20 = sbr.rel (!%p18_p7) target bundleno = 8 (0x8), region = 108 }
 0x2f0   :  { %2311 = vsyncpa [#allocation3], 1 }
 0x2f1   :  { %2313 = vsyncpa [#allocation3 + $0x1], 1 }
 0x2f2   :  { %2314 = vsyncpa [#allocation6], 1 }
 0x2f3   :  { %2315 = vsyncpa [#allocation4], 1 }
 0x2f4   :  { %2317 = vsyncpa [#allocation4 + $0x1], 1 }

</bundles_post_ra>
